<compile_context>
chip_gen: v6e
topology: v6e:2x2x1
jax: 0.10.0
libtpu: 0.0.40
codegen_flags: <defaults>
</compile_context>

<pallas_src>
import functools

import jax
import jax.numpy as jnp
from jax import lax
from jax.experimental import pallas as pl
from jax.experimental.pallas import tpu as pltpu


# ----------------------------------------------------------------------------
# Fused Pallas kernel: all LSTM layers + final FC in one invocation
# ----------------------------------------------------------------------------
def _fused_lstm_fc_kernel(*refs, num_layers, hidden_dim):
    """Argument layout (all VMEM refs, no grid):

    inputs : x_ref (T, B_pad, D)  [time-major, batch zero-padded to 8]
             per layer l: w_ih (D_l, 4H), w_hh (H, 4H), bias (1, 4H)
             fc_w (H, O_pad=128), fc_b (1, O_pad)
    output : out_ref (B_pad, O_pad)
    """
    H = hidden_dim
    G = 4 * H

    x_ref = refs[0]
    out_ref = refs[-1]
    layer_refs = [(refs[1 + 3 * l], refs[2 + 3 * l], refs[3 + 3 * l])
                  for l in range(num_layers)]
    fc_w_ref = refs[1 + 3 * num_layers]
    fc_b_ref = refs[2 + 3 * num_layers]

    T, B, D = x_ref.shape

    # ---- Hoisted layer-0 input projection + bias for the WHOLE sequence:
    # one (T*B, D) @ (D, 4H) MXU matmul instead of T skinny per-step matmuls.
    # The (T, B, D) -> (T*B, D) merge is layout-free because B == 8 sublanes.
    w_ih0 = layer_refs[0][0][...]                      # (D, 4H)
    bias0 = layer_refs[0][2][...]                      # (1, 4H)
    x2d = x_ref[...].reshape(T * B, D)
    preact0 = (jnp.dot(x2d, w_ih0, preferred_element_type=jnp.float32)
               + bias0).reshape(T, B, G)               # (T, B, 4H)

    # Weights loaded once; they stay in vregs / VMEM across the recurrence.
    w_hh = [layer_refs[l][1][...] for l in range(num_layers)]            # (H, 4H)
    w_ih = [None] + [layer_refs[l][0][...] for l in range(1, num_layers)]  # (H, 4H)
    bias = [None] + [layer_refs[l][2][...] for l in range(1, num_layers)]  # (1, 4H)

    # Lane mask selecting the g-gate block (lanes [2H, 3H)) of the (B, 4H) vreg.
    lane = lax.broadcasted_iota(jnp.int32, (B, G), 1)
    g_mask = jnp.logical_and(lane >= 2 * H, lane < 3 * H)

    # Per-layer recurrent state. h0 = c0 = 0 is handled by the t == 0 special
    # case below (no zeros are ever materialized / multiplied).
    h_state = [None] * num_layers
    c_state = [None] * num_layers

    # Wavefront schedule: time outermost, layers interleaved per timestep so
    # the independent per-layer matmul chains can overlap in the LLO schedule.
    # T and num_layers are small static ints -> full static unroll.
    for t in range(T):
        for l in range(num_layers):
            if l == 0:
                gates = preact0[t]                     # (B, 4H), bias folded
            else:
                # Per-step input projection for non-first layers, fed directly
                # by the previous layer's h of the SAME timestep (wavefront).
                gates = jnp.dot(h_state[l - 1], w_ih[l],
                                preferred_element_type=jnp.float32) + bias[l]
            if t > 0:
                # t == 0: h_prev = 0 -> skip the recurrent matmul entirely.
                gates = gates + jnp.dot(h_state[l], w_hh[l],
                                        preferred_element_type=jnp.float32)

            # Full-vreg nonlinearity: one sigmoid + one tanh over all 128 gate
            # lanes, g block selected by the lane mask (2 EUP issues, not 4).
            act = jnp.where(g_mask, jnp.tanh(gates), jax.nn.sigmoid(gates))
            i_g = act[:, 0 * H:1 * H]
            f_g = act[:, 1 * H:2 * H]
            g_g = act[:, 2 * H:3 * H]
            o_g = act[:, 3 * H:4 * H]

            if t == 0:
                c_new = i_g * g_g                      # c_prev = 0 -> skip f*c
            else:
                c_new = f_g * c_state[l] + i_g * g_g
            h_state[l] = o_g * jnp.tanh(c_new)
            c_state[l] = c_new

    # Final FC on the top layer's last hidden state (== out[:, -1, :]).
    # fc_w / fc_b are zero-padded to 128 output lanes -> lane-dense store.
    out_ref[...] = (
        jnp.dot(h_state[-1], fc_w_ref[...], preferred_element_type=jnp.float32)
        + fc_b_ref[...]
    ).astype(out_ref.dtype)


# ----------------------------------------------------------------------------
# One-time parameter preparation (hoisted out of the per-call path)
# ----------------------------------------------------------------------------
def prepare_lstm_params(layer_params, fc_w, fc_b, hidden_dim, lane=128):
    """Transpose / fold / pad all weights once.

    layer_params: list of (w_ih, w_hh, b_ih, b_hh) with PyTorch shapes
                  w_ih: (4H, D_l), w_hh: (4H, H), biases: (4H,)
    fc_w: (O, H), fc_b: (O,)
    Returns a flat tuple of kernel-ready f32 arrays.
    """
    H = hidden_dim
    flat = []
    for (w_ih, w_hh, b_ih, b_hh) in layer_params:
        flat.append(jnp.asarray(w_ih, jnp.float32).T)                    # (D_l, 4H)
        flat.append(jnp.asarray(w_hh, jnp.float32).T)                    # (H, 4H)
        flat.append((jnp.asarray(b_ih, jnp.float32)
                     + jnp.asarray(b_hh, jnp.float32)).reshape(1, 4 * H))

    O = fc_w.shape[0]
    O_pad = max(lane, ((O + lane - 1) // lane) * lane)
    fc_w_p = jnp.zeros((H, O_pad), jnp.float32).at[:, :O].set(
        jnp.asarray(fc_w, jnp.float32).T)                                # (H, O_pad)
    fc_b_p = jnp.zeros((1, O_pad), jnp.float32).at[0, :O].set(
        jnp.asarray(fc_b, jnp.float32))                                  # (1, O_pad)
    flat.append(fc_w_p)
    flat.append(fc_b_p)
    return tuple(flat)


# ----------------------------------------------------------------------------
# Jitted per-call forward: pad/transpose x -> one pallas_call -> slice
# ----------------------------------------------------------------------------
@functools.partial(jax.jit, static_argnames=("hidden_dim", "output_dim"))
def lstm_model_pallas(x, flat_params, *, hidden_dim, output_dim):
    """x: (B, T, input_dim) batch-first. Returns (B, output_dim)."""
    B, T, _ = x.shape
    H = hidden_dim
    num_layers = (len(flat_params) - 2) // 3
    O_pad = flat_params[-1].shape[-1]

    # Time-major layout + zero-pad batch to the 8-sublane granularity.
    B_pad = max(8, ((B + 7) // 8) * 8)
    x_tm = jnp.transpose(x, (1, 0, 2)).astype(jnp.float32)      # (T, B, D)
    if B_pad != B:
        x_tm = jnp.pad(x_tm, ((0, 0), (0, B_pad - B), (0, 0)))

    kernel = functools.partial(
        _fused_lstm_fc_kernel, num_layers=num_layers, hidden_dim=H)

    args = (x_tm,) + tuple(flat_params)
    out = pl.pallas_call(
        kernel,
        out_shape=jax.ShapeDtypeStruct((B_pad, O_pad), jnp.float32),
        in_specs=[pl.BlockSpec(memory_space=pltpu.MemorySpace.VMEM)
                  for _ in args],
        out_specs=pl.BlockSpec(memory_space=pltpu.MemorySpace.VMEM),
        compiler_params=pltpu.CompilerParams(
            vmem_limit_bytes=32 * 1024 * 1024),
    )(*args)

    return out[:B, :output_dim]


# ----------------------------------------------------------------------------
# Pure-JAX reference (for correctness check only)
# ----------------------------------------------------------------------------
def lstm_model_ref(x, layer_params, fc_w, fc_b, hidden_dim):
    B = x.shape[0]
    seq = jnp.transpose(x, (1, 0, 2))  # (T, B, D)
    for (w_ih, w_hh, b_ih, b_hh) in layer_params:
        def step(carry, x_t, w_ih=w_ih, w_hh=w_hh, b=b_ih + b_hh):
            h, c = carry
            gates = x_t @ w_ih.T + h @ w_hh.T + b
            i, f, g, o = jnp.split(gates, 4, axis=-1)
            c = jax.nn.sigmoid(f) * c + jax.nn.sigmoid(i) * jnp.tanh(g)
            h = jax.nn.sigmoid(o) * jnp.tanh(c)
            return (h, c), h
        init = (jnp.zeros((B, hidden_dim), jnp.float32),
                jnp.zeros((B, hidden_dim), jnp.float32))
        _, seq = lax.scan(step, init, seq)
    return seq[-1] @ fc_w.T + fc_b


# ----------------------------------------------------------------------------
# Main
# ----------------------------------------------------------------------------
if __name__ == "__main__":
    # Small shapes implied by the module's forward: x: (batch, seq_len, input_dim)
    batch, seq_len = 2, 8
    input_dim, hidden_dim, num_layers, output_dim = 16, 32, 2, 4

    key = jax.random.PRNGKey(0)
    k_x, key = jax.random.split(key)
    x = jax.random.normal(k_x, (batch, seq_len, input_dim), dtype=jnp.float32)

    # Deterministic parameter init (PyTorch-style U(-1/sqrt(H), 1/sqrt(H)))
    bound = 1.0 / jnp.sqrt(jnp.float32(hidden_dim))
    layer_params = []
    for layer in range(num_layers):
        d_in = input_dim if layer == 0 else hidden_dim
        keys = jax.random.split(jax.random.fold_in(key, layer), 4)
        w_ih = jax.random.uniform(keys[0], (4 * hidden_dim, d_in),
                                  minval=-bound, maxval=bound, dtype=jnp.float32)
        w_hh = jax.random.uniform(keys[1], (4 * hidden_dim, hidden_dim),
                                  minval=-bound, maxval=bound, dtype=jnp.float32)
        b_ih = jax.random.uniform(keys[2], (4 * hidden_dim,),
                                  minval=-bound, maxval=bound, dtype=jnp.float32)
        b_hh = jax.random.uniform(keys[3], (4 * hidden_dim,),
                                  minval=-bound, maxval=bound, dtype=jnp.float32)
        layer_params.append((w_ih, w_hh, b_ih, b_hh))

    k_fcw, k_fcb = jax.random.split(jax.random.fold_in(key, 1000))
    fc_w = jax.random.uniform(k_fcw, (output_dim, hidden_dim),
                              minval=-bound, maxval=bound, dtype=jnp.float32)
    fc_b = jax.random.uniform(k_fcb, (output_dim,),
                              minval=-bound, maxval=bound, dtype=jnp.float32)

    # One-time weight prep (hoisted out of the per-call path).
    flat_params = jax.block_until_ready(
        prepare_lstm_params(layer_params, fc_w, fc_b, hidden_dim))

    out = lstm_model_pallas(x, flat_params,
                            hidden_dim=hidden_dim, output_dim=output_dim)
    out = jax.block_until_ready(out)

    ref = jax.block_until_ready(
        lstm_model_ref(x, layer_params, fc_w, fc_b, hidden_dim))

    assert out.shape == (batch, output_dim), out.shape
    assert jnp.allclose(out, ref, atol=1e-4, rtol=1e-4), (out, ref)

    print("KERNEL_OK")
</pallas_src>

<mosaic_0001>
module attributes {stable_mosaic.version = 11 : i64} {
  func.func @_fused_lstm_fc_kernel(%arg0: memref<8x8x16xf32, #tpu.memory_space<vmem>>, %arg1: memref<16x128xf32, #tpu.memory_space<vmem>>, %arg2: memref<32x128xf32, #tpu.memory_space<vmem>>, %arg3: memref<1x128xf32, #tpu.memory_space<vmem>>, %arg4: memref<32x128xf32, #tpu.memory_space<vmem>>, %arg5: memref<32x128xf32, #tpu.memory_space<vmem>>, %arg6: memref<1x128xf32, #tpu.memory_space<vmem>>, %arg7: memref<32x128xf32, #tpu.memory_space<vmem>>, %arg8: memref<1x128xf32, #tpu.memory_space<vmem>>, %arg9: memref<8x128xf32, #tpu.memory_space<vmem>>) attributes {dimension_semantics = [], scalar_prefetch = 0 : i64, scratch_operands = 0 : i64, tpu.core_type = #tpu.core_type<tc>} {
    %c0 = arith.constant 0 : index
    %c0_0 = arith.constant 0 : index
    %0 = vector.load %arg1[%c0, %c0_0] : memref<16x128xf32, #tpu.memory_space<vmem>>, vector<16x128xf32>
    %c0_1 = arith.constant 0 : index
    %c0_2 = arith.constant 0 : index
    %1 = vector.load %arg3[%c0_1, %c0_2] : memref<1x128xf32, #tpu.memory_space<vmem>>, vector<1x128xf32>
    %c0_3 = arith.constant 0 : index
    %c0_4 = arith.constant 0 : index
    %c0_5 = arith.constant 0 : index
    %2 = vector.load %arg0[%c0_3, %c0_4, %c0_5] : memref<8x8x16xf32, #tpu.memory_space<vmem>>, vector<8x8x16xf32>
    %3 = vector.shape_cast %2 : vector<8x8x16xf32> to vector<64x16xf32>
    %cst = arith.constant dense<0.000000e+00> : vector<64x128xf32>
    %4 = tpu.matmul %3, %0, %cst {dimension_numbers = #tpu.dot_dimension_numbers<[1], [0], [0], [1], [0, 0, 1, 1], [], []>} : vector<64x16xf32>, vector<16x128xf32>, vector<64x128xf32> -> vector<64x128xf32>
    %5 = vector.broadcast %1 : vector<1x128xf32> to vector<64x128xf32>
    %6 = arith.addf %4, %5 : vector<64x128xf32>
    %7 = vector.shape_cast %6 : vector<64x128xf32> to vector<8x8x128xf32>
    %c0_6 = arith.constant 0 : index
    %c0_7 = arith.constant 0 : index
    %8 = vector.load %arg2[%c0_6, %c0_7] : memref<32x128xf32, #tpu.memory_space<vmem>>, vector<32x128xf32>
    %c0_8 = arith.constant 0 : index
    %c0_9 = arith.constant 0 : index
    %9 = vector.load %arg5[%c0_8, %c0_9] : memref<32x128xf32, #tpu.memory_space<vmem>>, vector<32x128xf32>
    %c0_10 = arith.constant 0 : index
    %c0_11 = arith.constant 0 : index
    %10 = vector.load %arg4[%c0_10, %c0_11] : memref<32x128xf32, #tpu.memory_space<vmem>>, vector<32x128xf32>
    %c0_12 = arith.constant 0 : index
    %c0_13 = arith.constant 0 : index
    %11 = vector.load %arg6[%c0_12, %c0_13] : memref<1x128xf32, #tpu.memory_space<vmem>>, vector<1x128xf32>
    %12 = tpu.iota {dimensions = array<i32: 1>} : vector<8x128xi32>
    %c64_i32 = arith.constant 64 : i32
    %13 = vector.broadcast %c64_i32 : i32 to vector<8x128xi32>
    %14 = arith.cmpi sge, %12, %13 : vector<8x128xi32>
    %c96_i32 = arith.constant 96 : i32
    %15 = vector.broadcast %c96_i32 : i32 to vector<8x128xi32>
    %16 = arith.cmpi slt, %12, %15 : vector<8x128xi32>
    %17 = arith.andi %14, %16 : vector<8x128xi1>
    %18 = vector.extract_strided_slice %7 {offsets = [0, 0, 0], sizes = [1, 8, 128], strides = [1, 1, 1]} : vector<8x8x128xf32> to vector<1x8x128xf32>
    %19 = vector.shape_cast %18 : vector<1x8x128xf32> to vector<8x128xf32>
    %20 = math.tanh %19 : vector<8x128xf32>
    %21 = arith.negf %19 : vector<8x128xf32>
    %22 = math.exp %21 : vector<8x128xf32>
    %cst_14 = arith.constant 1.000000e+00 : f32
    %23 = vector.broadcast %cst_14 : f32 to vector<8x128xf32>
    %24 = arith.addf %23, %22 : vector<8x128xf32>
    %25 = arith.divf %23, %24 : vector<8x128xf32>
    %26 = arith.select %17, %20, %25 : vector<8x128xi1>, vector<8x128xf32>
    %27 = vector.extract_strided_slice %26 {offsets = [0, 0], sizes = [8, 32], strides = [1, 1]} : vector<8x128xf32> to vector<8x32xf32>
    %28 = vector.extract_strided_slice %26 {offsets = [0, 64], sizes = [8, 32], strides = [1, 1]} : vector<8x128xf32> to vector<8x32xf32>
    %29 = vector.extract_strided_slice %26 {offsets = [0, 96], sizes = [8, 32], strides = [1, 1]} : vector<8x128xf32> to vector<8x32xf32>
    %30 = arith.mulf %27, %28 : vector<8x32xf32>
    %31 = math.tanh %30 : vector<8x32xf32>
    %32 = arith.mulf %29, %31 : vector<8x32xf32>
    %cst_15 = arith.constant dense<0.000000e+00> : vector<8x128xf32>
    %33 = tpu.matmul %32, %10, %cst_15 {dimension_numbers = #tpu.dot_dimension_numbers<[1], [0], [0], [1], [0, 0, 1, 1], [], []>} : vector<8x32xf32>, vector<32x128xf32>, vector<8x128xf32> -> vector<8x128xf32>
    %34 = vector.broadcast %11 : vector<1x128xf32> to vector<8x128xf32>
    %35 = arith.addf %33, %34 : vector<8x128xf32>
    %36 = math.tanh %35 : vector<8x128xf32>
    %37 = arith.negf %35 : vector<8x128xf32>
    %38 = math.exp %37 : vector<8x128xf32>
    %cst_16 = arith.constant 1.000000e+00 : f32
    %39 = vector.broadcast %cst_16 : f32 to vector<8x128xf32>
    %40 = arith.addf %39, %38 : vector<8x128xf32>
    %41 = arith.divf %39, %40 : vector<8x128xf32>
    %42 = arith.select %17, %36, %41 : vector<8x128xi1>, vector<8x128xf32>
    %43 = vector.extract_strided_slice %42 {offsets = [0, 0], sizes = [8, 32], strides = [1, 1]} : vector<8x128xf32> to vector<8x32xf32>
    %44 = vector.extract_strided_slice %42 {offsets = [0, 64], sizes = [8, 32], strides = [1, 1]} : vector<8x128xf32> to vector<8x32xf32>
    %45 = vector.extract_strided_slice %42 {offsets = [0, 96], sizes = [8, 32], strides = [1, 1]} : vector<8x128xf32> to vector<8x32xf32>
    %46 = arith.mulf %43, %44 : vector<8x32xf32>
    %47 = math.tanh %46 : vector<8x32xf32>
    %48 = arith.mulf %45, %47 : vector<8x32xf32>
    %49 = vector.extract_strided_slice %7 {offsets = [1, 0, 0], sizes = [1, 8, 128], strides = [1, 1, 1]} : vector<8x8x128xf32> to vector<1x8x128xf32>
    %50 = vector.shape_cast %49 : vector<1x8x128xf32> to vector<8x128xf32>
    %cst_17 = arith.constant dense<0.000000e+00> : vector<8x128xf32>
    %51 = tpu.matmul %32, %8, %cst_17 {dimension_numbers = #tpu.dot_dimension_numbers<[1], [0], [0], [1], [0, 0, 1, 1], [], []>} : vector<8x32xf32>, vector<32x128xf32>, vector<8x128xf32> -> vector<8x128xf32>
    %52 = arith.addf %50, %51 : vector<8x128xf32>
    %53 = math.tanh %52 : vector<8x128xf32>
    %54 = arith.negf %52 : vector<8x128xf32>
    %55 = math.exp %54 : vector<8x128xf32>
    %cst_18 = arith.constant 1.000000e+00 : f32
    %56 = vector.broadcast %cst_18 : f32 to vector<8x128xf32>
    %57 = arith.addf %56, %55 : vector<8x128xf32>
    %58 = arith.divf %56, %57 : vector<8x128xf32>
    %59 = arith.select %17, %53, %58 : vector<8x128xi1>, vector<8x128xf32>
    %60 = vector.extract_strided_slice %59 {offsets = [0, 0], sizes = [8, 32], strides = [1, 1]} : vector<8x128xf32> to vector<8x32xf32>
    %61 = vector.extract_strided_slice %59 {offsets = [0, 32], sizes = [8, 32], strides = [1, 1]} : vector<8x128xf32> to vector<8x32xf32>
    %62 = vector.extract_strided_slice %59 {offsets = [0, 64], sizes = [8, 32], strides = [1, 1]} : vector<8x128xf32> to vector<8x32xf32>
    %63 = vector.extract_strided_slice %59 {offsets = [0, 96], sizes = [8, 32], strides = [1, 1]} : vector<8x128xf32> to vector<8x32xf32>
    %64 = arith.mulf %61, %30 : vector<8x32xf32>
    %65 = arith.mulf %60, %62 : vector<8x32xf32>
    %66 = arith.addf %64, %65 : vector<8x32xf32>
    %67 = math.tanh %66 : vector<8x32xf32>
    %68 = arith.mulf %63, %67 : vector<8x32xf32>
    %cst_19 = arith.constant dense<0.000000e+00> : vector<8x128xf32>
    %69 = tpu.matmul %68, %10, %cst_19 {dimension_numbers = #tpu.dot_dimension_numbers<[1], [0], [0], [1], [0, 0, 1, 1], [], []>} : vector<8x32xf32>, vector<32x128xf32>, vector<8x128xf32> -> vector<8x128xf32>
    %70 = vector.broadcast %11 : vector<1x128xf32> to vector<8x128xf32>
    %71 = arith.addf %69, %70 : vector<8x128xf32>
    %cst_20 = arith.constant dense<0.000000e+00> : vector<8x128xf32>
    %72 = tpu.matmul %48, %9, %cst_20 {dimension_numbers = #tpu.dot_dimension_numbers<[1], [0], [0], [1], [0, 0, 1, 1], [], []>} : vector<8x32xf32>, vector<32x128xf32>, vector<8x128xf32> -> vector<8x128xf32>
    %73 = arith.addf %71, %72 : vector<8x128xf32>
    %74 = math.tanh %73 : vector<8x128xf32>
    %75 = arith.negf %73 : vector<8x128xf32>
    %76 = math.exp %75 : vector<8x128xf32>
    %cst_21 = arith.constant 1.000000e+00 : f32
    %77 = vector.broadcast %cst_21 : f32 to vector<8x128xf32>
    %78 = arith.addf %77, %76 : vector<8x128xf32>
    %79 = arith.divf %77, %78 : vector<8x128xf32>
    %80 = arith.select %17, %74, %79 : vector<8x128xi1>, vector<8x128xf32>
    %81 = vector.extract_strided_slice %80 {offsets = [0, 0], sizes = [8, 32], strides = [1, 1]} : vector<8x128xf32> to vector<8x32xf32>
    %82 = vector.extract_strided_slice %80 {offsets = [0, 32], sizes = [8, 32], strides = [1, 1]} : vector<8x128xf32> to vector<8x32xf32>
    %83 = vector.extract_strided_slice %80 {offsets = [0, 64], sizes = [8, 32], strides = [1, 1]} : vector<8x128xf32> to vector<8x32xf32>
    %84 = vector.extract_strided_slice %80 {offsets = [0, 96], sizes = [8, 32], strides = [1, 1]} : vector<8x128xf32> to vector<8x32xf32>
    %85 = arith.mulf %82, %46 : vector<8x32xf32>
    %86 = arith.mulf %81, %83 : vector<8x32xf32>
    %87 = arith.addf %85, %86 : vector<8x32xf32>
    %88 = math.tanh %87 : vector<8x32xf32>
    %89 = arith.mulf %84, %88 : vector<8x32xf32>
    %90 = vector.extract_strided_slice %7 {offsets = [2, 0, 0], sizes = [1, 8, 128], strides = [1, 1, 1]} : vector<8x8x128xf32> to vector<1x8x128xf32>
    %91 = vector.shape_cast %90 : vector<1x8x128xf32> to vector<8x128xf32>
    %cst_22 = arith.constant dense<0.000000e+00> : vector<8x128xf32>
    %92 = tpu.matmul %68, %8, %cst_22 {dimension_numbers = #tpu.dot_dimension_numbers<[1], [0], [0], [1], [0, 0, 1, 1], [], []>} : vector<8x32xf32>, vector<32x128xf32>, vector<8x128xf32> -> vector<8x128xf32>
    %93 = arith.addf %91, %92 : vector<8x128xf32>
    %94 = math.tanh %93 : vector<8x128xf32>
    %95 = arith.negf %93 : vector<8x128xf32>
    %96 = math.exp %95 : vector<8x128xf32>
    %cst_23 = arith.constant 1.000000e+00 : f32
    %97 = vector.broadcast %cst_23 : f32 to vector<8x128xf32>
    %98 = arith.addf %97, %96 : vector<8x128xf32>
    %99 = arith.divf %97, %98 : vector<8x128xf32>
    %100 = arith.select %17, %94, %99 : vector<8x128xi1>, vector<8x128xf32>
    %101 = vector.extract_strided_slice %100 {offsets = [0, 0], sizes = [8, 32], strides = [1, 1]} : vector<8x128xf32> to vector<8x32xf32>
    %102 = vector.extract_strided_slice %100 {offsets = [0, 32], sizes = [8, 32], strides = [1, 1]} : vector<8x128xf32> to vector<8x32xf32>
    %103 = vector.extract_strided_slice %100 {offsets = [0, 64], sizes = [8, 32], strides = [1, 1]} : vector<8x128xf32> to vector<8x32xf32>
    %104 = vector.extract_strided_slice %100 {offsets = [0, 96], sizes = [8, 32], strides = [1, 1]} : vector<8x128xf32> to vector<8x32xf32>
    %105 = arith.mulf %102, %66 : vector<8x32xf32>
    %106 = arith.mulf %101, %103 : vector<8x32xf32>
    %107 = arith.addf %105, %106 : vector<8x32xf32>
    %108 = math.tanh %107 : vector<8x32xf32>
    %109 = arith.mulf %104, %108 : vector<8x32xf32>
    %cst_24 = arith.constant dense<0.000000e+00> : vector<8x128xf32>
    %110 = tpu.matmul %109, %10, %cst_24 {dimension_numbers = #tpu.dot_dimension_numbers<[1], [0], [0], [1], [0, 0, 1, 1], [], []>} : vector<8x32xf32>, vector<32x128xf32>, vector<8x128xf32> -> vector<8x128xf32>
    %111 = vector.broadcast %11 : vector<1x128xf32> to vector<8x128xf32>
    %112 = arith.addf %110, %111 : vector<8x128xf32>
    %cst_25 = arith.constant dense<0.000000e+00> : vector<8x128xf32>
    %113 = tpu.matmul %89, %9, %cst_25 {dimension_numbers = #tpu.dot_dimension_numbers<[1], [0], [0], [1], [0, 0, 1, 1], [], []>} : vector<8x32xf32>, vector<32x128xf32>, vector<8x128xf32> -> vector<8x128xf32>
    %114 = arith.addf %112, %113 : vector<8x128xf32>
    %115 = math.tanh %114 : vector<8x128xf32>
    %116 = arith.negf %114 : vector<8x128xf32>
    %117 = math.exp %116 : vector<8x128xf32>
    %cst_26 = arith.constant 1.000000e+00 : f32
    %118 = vector.broadcast %cst_26 : f32 to vector<8x128xf32>
    %119 = arith.addf %118, %117 : vector<8x128xf32>
    %120 = arith.divf %118, %119 : vector<8x128xf32>
    %121 = arith.select %17, %115, %120 : vector<8x128xi1>, vector<8x128xf32>
    %122 = vector.extract_strided_slice %121 {offsets = [0, 0], sizes = [8, 32], strides = [1, 1]} : vector<8x128xf32> to vector<8x32xf32>
    %123 = vector.extract_strided_slice %121 {offsets = [0, 32], sizes = [8, 32], strides = [1, 1]} : vector<8x128xf32> to vector<8x32xf32>
    %124 = vector.extract_strided_slice %121 {offsets = [0, 64], sizes = [8, 32], strides = [1, 1]} : vector<8x128xf32> to vector<8x32xf32>
    %125 = vector.extract_strided_slice %121 {offsets = [0, 96], sizes = [8, 32], strides = [1, 1]} : vector<8x128xf32> to vector<8x32xf32>
    %126 = arith.mulf %123, %87 : vector<8x32xf32>
    %127 = arith.mulf %122, %124 : vector<8x32xf32>
    %128 = arith.addf %126, %127 : vector<8x32xf32>
    %129 = math.tanh %128 : vector<8x32xf32>
    %130 = arith.mulf %125, %129 : vector<8x32xf32>
    %131 = vector.extract_strided_slice %7 {offsets = [3, 0, 0], sizes = [1, 8, 128], strides = [1, 1, 1]} : vector<8x8x128xf32> to vector<1x8x128xf32>
    %132 = vector.shape_cast %131 : vector<1x8x128xf32> to vector<8x128xf32>
    %cst_27 = arith.constant dense<0.000000e+00> : vector<8x128xf32>
    %133 = tpu.matmul %109, %8, %cst_27 {dimension_numbers = #tpu.dot_dimension_numbers<[1], [0], [0], [1], [0, 0, 1, 1], [], []>} : vector<8x32xf32>, vector<32x128xf32>, vector<8x128xf32> -> vector<8x128xf32>
    %134 = arith.addf %132, %133 : vector<8x128xf32>
    %135 = math.tanh %134 : vector<8x128xf32>
    %136 = arith.negf %134 : vector<8x128xf32>
    %137 = math.exp %136 : vector<8x128xf32>
    %cst_28 = arith.constant 1.000000e+00 : f32
    %138 = vector.broadcast %cst_28 : f32 to vector<8x128xf32>
    %139 = arith.addf %138, %137 : vector<8x128xf32>
    %140 = arith.divf %138, %139 : vector<8x128xf32>
    %141 = arith.select %17, %135, %140 : vector<8x128xi1>, vector<8x128xf32>
    %142 = vector.extract_strided_slice %141 {offsets = [0, 0], sizes = [8, 32], strides = [1, 1]} : vector<8x128xf32> to vector<8x32xf32>
    %143 = vector.extract_strided_slice %141 {offsets = [0, 32], sizes = [8, 32], strides = [1, 1]} : vector<8x128xf32> to vector<8x32xf32>
    %144 = vector.extract_strided_slice %141 {offsets = [0, 64], sizes = [8, 32], strides = [1, 1]} : vector<8x128xf32> to vector<8x32xf32>
    %145 = vector.extract_strided_slice %141 {offsets = [0, 96], sizes = [8, 32], strides = [1, 1]} : vector<8x128xf32> to vector<8x32xf32>
    %146 = arith.mulf %143, %107 : vector<8x32xf32>
    %147 = arith.mulf %142, %144 : vector<8x32xf32>
    %148 = arith.addf %146, %147 : vector<8x32xf32>
    %149 = math.tanh %148 : vector<8x32xf32>
    %150 = arith.mulf %145, %149 : vector<8x32xf32>
    %cst_29 = arith.constant dense<0.000000e+00> : vector<8x128xf32>
    %151 = tpu.matmul %150, %10, %cst_29 {dimension_numbers = #tpu.dot_dimension_numbers<[1], [0], [0], [1], [0, 0, 1, 1], [], []>} : vector<8x32xf32>, vector<32x128xf32>, vector<8x128xf32> -> vector<8x128xf32>
    %152 = vector.broadcast %11 : vector<1x128xf32> to vector<8x128xf32>
    %153 = arith.addf %151, %152 : vector<8x128xf32>
    %cst_30 = arith.constant dense<0.000000e+00> : vector<8x128xf32>
    %154 = tpu.matmul %130, %9, %cst_30 {dimension_numbers = #tpu.dot_dimension_numbers<[1], [0], [0], [1], [0, 0, 1, 1], [], []>} : vector<8x32xf32>, vector<32x128xf32>, vector<8x128xf32> -> vector<8x128xf32>
    %155 = arith.addf %153, %154 : vector<8x128xf32>
    %156 = math.tanh %155 : vector<8x128xf32>
    %157 = arith.negf %155 : vector<8x128xf32>
    %158 = math.exp %157 : vector<8x128xf32>
    %cst_31 = arith.constant 1.000000e+00 : f32
    %159 = vector.broadcast %cst_31 : f32 to vector<8x128xf32>
    %160 = arith.addf %159, %158 : vector<8x128xf32>
    %161 = arith.divf %159, %160 : vector<8x128xf32>
    %162 = arith.select %17, %156, %161 : vector<8x128xi1>, vector<8x128xf32>
    %163 = vector.extract_strided_slice %162 {offsets = [0, 0], sizes = [8, 32], strides = [1, 1]} : vector<8x128xf32> to vector<8x32xf32>
    %164 = vector.extract_strided_slice %162 {offsets = [0, 32], sizes = [8, 32], strides = [1, 1]} : vector<8x128xf32> to vector<8x32xf32>
    %165 = vector.extract_strided_slice %162 {offsets = [0, 64], sizes = [8, 32], strides = [1, 1]} : vector<8x128xf32> to vector<8x32xf32>
    %166 = vector.extract_strided_slice %162 {offsets = [0, 96], sizes = [8, 32], strides = [1, 1]} : vector<8x128xf32> to vector<8x32xf32>
    %167 = arith.mulf %164, %128 : vector<8x32xf32>
    %168 = arith.mulf %163, %165 : vector<8x32xf32>
    %169 = arith.addf %167, %168 : vector<8x32xf32>
    %170 = math.tanh %169 : vector<8x32xf32>
    %171 = arith.mulf %166, %170 : vector<8x32xf32>
    %172 = vector.extract_strided_slice %7 {offsets = [4, 0, 0], sizes = [1, 8, 128], strides = [1, 1, 1]} : vector<8x8x128xf32> to vector<1x8x128xf32>
    %173 = vector.shape_cast %172 : vector<1x8x128xf32> to vector<8x128xf32>
    %cst_32 = arith.constant dense<0.000000e+00> : vector<8x128xf32>
    %174 = tpu.matmul %150, %8, %cst_32 {dimension_numbers = #tpu.dot_dimension_numbers<[1], [0], [0], [1], [0, 0, 1, 1], [], []>} : vector<8x32xf32>, vector<32x128xf32>, vector<8x128xf32> -> vector<8x128xf32>
    %175 = arith.addf %173, %174 : vector<8x128xf32>
    %176 = math.tanh %175 : vector<8x128xf32>
    %177 = arith.negf %175 : vector<8x128xf32>
    %178 = math.exp %177 : vector<8x128xf32>
    %cst_33 = arith.constant 1.000000e+00 : f32
    %179 = vector.broadcast %cst_33 : f32 to vector<8x128xf32>
    %180 = arith.addf %179, %178 : vector<8x128xf32>
    %181 = arith.divf %179, %180 : vector<8x128xf32>
    %182 = arith.select %17, %176, %181 : vector<8x128xi1>, vector<8x128xf32>
    %183 = vector.extract_strided_slice %182 {offsets = [0, 0], sizes = [8, 32], strides = [1, 1]} : vector<8x128xf32> to vector<8x32xf32>
    %184 = vector.extract_strided_slice %182 {offsets = [0, 32], sizes = [8, 32], strides = [1, 1]} : vector<8x128xf32> to vector<8x32xf32>
    %185 = vector.extract_strided_slice %182 {offsets = [0, 64], sizes = [8, 32], strides = [1, 1]} : vector<8x128xf32> to vector<8x32xf32>
    %186 = vector.extract_strided_slice %182 {offsets = [0, 96], sizes = [8, 32], strides = [1, 1]} : vector<8x128xf32> to vector<8x32xf32>
    %187 = arith.mulf %184, %148 : vector<8x32xf32>
    %188 = arith.mulf %183, %185 : vector<8x32xf32>
    %189 = arith.addf %187, %188 : vector<8x32xf32>
    %190 = math.tanh %189 : vector<8x32xf32>
    %191 = arith.mulf %186, %190 : vector<8x32xf32>
    %cst_34 = arith.constant dense<0.000000e+00> : vector<8x128xf32>
    %192 = tpu.matmul %191, %10, %cst_34 {dimension_numbers = #tpu.dot_dimension_numbers<[1], [0], [0], [1], [0, 0, 1, 1], [], []>} : vector<8x32xf32>, vector<32x128xf32>, vector<8x128xf32> -> vector<8x128xf32>
    %193 = vector.broadcast %11 : vector<1x128xf32> to vector<8x128xf32>
    %194 = arith.addf %192, %193 : vector<8x128xf32>
    %cst_35 = arith.constant dense<0.000000e+00> : vector<8x128xf32>
    %195 = tpu.matmul %171, %9, %cst_35 {dimension_numbers = #tpu.dot_dimension_numbers<[1], [0], [0], [1], [0, 0, 1, 1], [], []>} : vector<8x32xf32>, vector<32x128xf32>, vector<8x128xf32> -> vector<8x128xf32>
    %196 = arith.addf %194, %195 : vector<8x128xf32>
    %197 = math.tanh %196 : vector<8x128xf32>
    %198 = arith.negf %196 : vector<8x128xf32>
    %199 = math.exp %198 : vector<8x128xf32>
    %cst_36 = arith.constant 1.000000e+00 : f32
    %200 = vector.broadcast %cst_36 : f32 to vector<8x128xf32>
    %201 = arith.addf %200, %199 : vector<8x128xf32>
    %202 = arith.divf %200, %201 : vector<8x128xf32>
    %203 = arith.select %17, %197, %202 : vector<8x128xi1>, vector<8x128xf32>
    %204 = vector.extract_strided_slice %203 {offsets = [0, 0], sizes = [8, 32], strides = [1, 1]} : vector<8x128xf32> to vector<8x32xf32>
    %205 = vector.extract_strided_slice %203 {offsets = [0, 32], sizes = [8, 32], strides = [1, 1]} : vector<8x128xf32> to vector<8x32xf32>
    %206 = vector.extract_strided_slice %203 {offsets = [0, 64], sizes = [8, 32], strides = [1, 1]} : vector<8x128xf32> to vector<8x32xf32>
    %207 = vector.extract_strided_slice %203 {offsets = [0, 96], sizes = [8, 32], strides = [1, 1]} : vector<8x128xf32> to vector<8x32xf32>
    %208 = arith.mulf %205, %169 : vector<8x32xf32>
    %209 = arith.mulf %204, %206 : vector<8x32xf32>
    %210 = arith.addf %208, %209 : vector<8x32xf32>
    %211 = math.tanh %210 : vector<8x32xf32>
    %212 = arith.mulf %207, %211 : vector<8x32xf32>
    %213 = vector.extract_strided_slice %7 {offsets = [5, 0, 0], sizes = [1, 8, 128], strides = [1, 1, 1]} : vector<8x8x128xf32> to vector<1x8x128xf32>
    %214 = vector.shape_cast %213 : vector<1x8x128xf32> to vector<8x128xf32>
    %cst_37 = arith.constant dense<0.000000e+00> : vector<8x128xf32>
    %215 = tpu.matmul %191, %8, %cst_37 {dimension_numbers = #tpu.dot_dimension_numbers<[1], [0], [0], [1], [0, 0, 1, 1], [], []>} : vector<8x32xf32>, vector<32x128xf32>, vector<8x128xf32> -> vector<8x128xf32>
    %216 = arith.addf %214, %215 : vector<8x128xf32>
    %217 = math.tanh %216 : vector<8x128xf32>
    %218 = arith.negf %216 : vector<8x128xf32>
    %219 = math.exp %218 : vector<8x128xf32>
    %cst_38 = arith.constant 1.000000e+00 : f32
    %220 = vector.broadcast %cst_38 : f32 to vector<8x128xf32>
    %221 = arith.addf %220, %219 : vector<8x128xf32>
    %222 = arith.divf %220, %221 : vector<8x128xf32>
    %223 = arith.select %17, %217, %222 : vector<8x128xi1>, vector<8x128xf32>
    %224 = vector.extract_strided_slice %223 {offsets = [0, 0], sizes = [8, 32], strides = [1, 1]} : vector<8x128xf32> to vector<8x32xf32>
    %225 = vector.extract_strided_slice %223 {offsets = [0, 32], sizes = [8, 32], strides = [1, 1]} : vector<8x128xf32> to vector<8x32xf32>
    %226 = vector.extract_strided_slice %223 {offsets = [0, 64], sizes = [8, 32], strides = [1, 1]} : vector<8x128xf32> to vector<8x32xf32>
    %227 = vector.extract_strided_slice %223 {offsets = [0, 96], sizes = [8, 32], strides = [1, 1]} : vector<8x128xf32> to vector<8x32xf32>
    %228 = arith.mulf %225, %189 : vector<8x32xf32>
    %229 = arith.mulf %224, %226 : vector<8x32xf32>
    %230 = arith.addf %228, %229 : vector<8x32xf32>
    %231 = math.tanh %230 : vector<8x32xf32>
    %232 = arith.mulf %227, %231 : vector<8x32xf32>
    %cst_39 = arith.constant dense<0.000000e+00> : vector<8x128xf32>
    %233 = tpu.matmul %232, %10, %cst_39 {dimension_numbers = #tpu.dot_dimension_numbers<[1], [0], [0], [1], [0, 0, 1, 1], [], []>} : vector<8x32xf32>, vector<32x128xf32>, vector<8x128xf32> -> vector<8x128xf32>
    %234 = vector.broadcast %11 : vector<1x128xf32> to vector<8x128xf32>
    %235 = arith.addf %233, %234 : vector<8x128xf32>
    %cst_40 = arith.constant dense<0.000000e+00> : vector<8x128xf32>
    %236 = tpu.matmul %212, %9, %cst_40 {dimension_numbers = #tpu.dot_dimension_numbers<[1], [0], [0], [1], [0, 0, 1, 1], [], []>} : vector<8x32xf32>, vector<32x128xf32>, vector<8x128xf32> -> vector<8x128xf32>
    %237 = arith.addf %235, %236 : vector<8x128xf32>
    %238 = math.tanh %237 : vector<8x128xf32>
    %239 = arith.negf %237 : vector<8x128xf32>
    %240 = math.exp %239 : vector<8x128xf32>
    %cst_41 = arith.constant 1.000000e+00 : f32
    %241 = vector.broadcast %cst_41 : f32 to vector<8x128xf32>
    %242 = arith.addf %241, %240 : vector<8x128xf32>
    %243 = arith.divf %241, %242 : vector<8x128xf32>
    %244 = arith.select %17, %238, %243 : vector<8x128xi1>, vector<8x128xf32>
    %245 = vector.extract_strided_slice %244 {offsets = [0, 0], sizes = [8, 32], strides = [1, 1]} : vector<8x128xf32> to vector<8x32xf32>
    %246 = vector.extract_strided_slice %244 {offsets = [0, 32], sizes = [8, 32], strides = [1, 1]} : vector<8x128xf32> to vector<8x32xf32>
    %247 = vector.extract_strided_slice %244 {offsets = [0, 64], sizes = [8, 32], strides = [1, 1]} : vector<8x128xf32> to vector<8x32xf32>
    %248 = vector.extract_strided_slice %244 {offsets = [0, 96], sizes = [8, 32], strides = [1, 1]} : vector<8x128xf32> to vector<8x32xf32>
    %249 = arith.mulf %246, %210 : vector<8x32xf32>
    %250 = arith.mulf %245, %247 : vector<8x32xf32>
    %251 = arith.addf %249, %250 : vector<8x32xf32>
    %252 = math.tanh %251 : vector<8x32xf32>
    %253 = arith.mulf %248, %252 : vector<8x32xf32>
    %254 = vector.extract_strided_slice %7 {offsets = [6, 0, 0], sizes = [1, 8, 128], strides = [1, 1, 1]} : vector<8x8x128xf32> to vector<1x8x128xf32>
    %255 = vector.shape_cast %254 : vector<1x8x128xf32> to vector<8x128xf32>
    %cst_42 = arith.constant dense<0.000000e+00> : vector<8x128xf32>
    %256 = tpu.matmul %232, %8, %cst_42 {dimension_numbers = #tpu.dot_dimension_numbers<[1], [0], [0], [1], [0, 0, 1, 1], [], []>} : vector<8x32xf32>, vector<32x128xf32>, vector<8x128xf32> -> vector<8x128xf32>
    %257 = arith.addf %255, %256 : vector<8x128xf32>
    %258 = math.tanh %257 : vector<8x128xf32>
    %259 = arith.negf %257 : vector<8x128xf32>
    %260 = math.exp %259 : vector<8x128xf32>
    %cst_43 = arith.constant 1.000000e+00 : f32
    %261 = vector.broadcast %cst_43 : f32 to vector<8x128xf32>
    %262 = arith.addf %261, %260 : vector<8x128xf32>
    %263 = arith.divf %261, %262 : vector<8x128xf32>
    %264 = arith.select %17, %258, %263 : vector<8x128xi1>, vector<8x128xf32>
    %265 = vector.extract_strided_slice %264 {offsets = [0, 0], sizes = [8, 32], strides = [1, 1]} : vector<8x128xf32> to vector<8x32xf32>
    %266 = vector.extract_strided_slice %264 {offsets = [0, 32], sizes = [8, 32], strides = [1, 1]} : vector<8x128xf32> to vector<8x32xf32>
    %267 = vector.extract_strided_slice %264 {offsets = [0, 64], sizes = [8, 32], strides = [1, 1]} : vector<8x128xf32> to vector<8x32xf32>
    %268 = vector.extract_strided_slice %264 {offsets = [0, 96], sizes = [8, 32], strides = [1, 1]} : vector<8x128xf32> to vector<8x32xf32>
    %269 = arith.mulf %266, %230 : vector<8x32xf32>
    %270 = arith.mulf %265, %267 : vector<8x32xf32>
    %271 = arith.addf %269, %270 : vector<8x32xf32>
    %272 = math.tanh %271 : vector<8x32xf32>
    %273 = arith.mulf %268, %272 : vector<8x32xf32>
    %cst_44 = arith.constant dense<0.000000e+00> : vector<8x128xf32>
    %274 = tpu.matmul %273, %10, %cst_44 {dimension_numbers = #tpu.dot_dimension_numbers<[1], [0], [0], [1], [0, 0, 1, 1], [], []>} : vector<8x32xf32>, vector<32x128xf32>, vector<8x128xf32> -> vector<8x128xf32>
    %275 = vector.broadcast %11 : vector<1x128xf32> to vector<8x128xf32>
    %276 = arith.addf %274, %275 : vector<8x128xf32>
    %cst_45 = arith.constant dense<0.000000e+00> : vector<8x128xf32>
    %277 = tpu.matmul %253, %9, %cst_45 {dimension_numbers = #tpu.dot_dimension_numbers<[1], [0], [0], [1], [0, 0, 1, 1], [], []>} : vector<8x32xf32>, vector<32x128xf32>, vector<8x128xf32> -> vector<8x128xf32>
    %278 = arith.addf %276, %277 : vector<8x128xf32>
    %279 = math.tanh %278 : vector<8x128xf32>
    %280 = arith.negf %278 : vector<8x128xf32>
    %281 = math.exp %280 : vector<8x128xf32>
    %cst_46 = arith.constant 1.000000e+00 : f32
    %282 = vector.broadcast %cst_46 : f32 to vector<8x128xf32>
    %283 = arith.addf %282, %281 : vector<8x128xf32>
    %284 = arith.divf %282, %283 : vector<8x128xf32>
    %285 = arith.select %17, %279, %284 : vector<8x128xi1>, vector<8x128xf32>
    %286 = vector.extract_strided_slice %285 {offsets = [0, 0], sizes = [8, 32], strides = [1, 1]} : vector<8x128xf32> to vector<8x32xf32>
    %287 = vector.extract_strided_slice %285 {offsets = [0, 32], sizes = [8, 32], strides = [1, 1]} : vector<8x128xf32> to vector<8x32xf32>
    %288 = vector.extract_strided_slice %285 {offsets = [0, 64], sizes = [8, 32], strides = [1, 1]} : vector<8x128xf32> to vector<8x32xf32>
    %289 = vector.extract_strided_slice %285 {offsets = [0, 96], sizes = [8, 32], strides = [1, 1]} : vector<8x128xf32> to vector<8x32xf32>
    %290 = arith.mulf %287, %251 : vector<8x32xf32>
    %291 = arith.mulf %286, %288 : vector<8x32xf32>
    %292 = arith.addf %290, %291 : vector<8x32xf32>
    %293 = math.tanh %292 : vector<8x32xf32>
    %294 = arith.mulf %289, %293 : vector<8x32xf32>
    %295 = vector.extract_strided_slice %7 {offsets = [7, 0, 0], sizes = [1, 8, 128], strides = [1, 1, 1]} : vector<8x8x128xf32> to vector<1x8x128xf32>
    %296 = vector.shape_cast %295 : vector<1x8x128xf32> to vector<8x128xf32>
    %cst_47 = arith.constant dense<0.000000e+00> : vector<8x128xf32>
    %297 = tpu.matmul %273, %8, %cst_47 {dimension_numbers = #tpu.dot_dimension_numbers<[1], [0], [0], [1], [0, 0, 1, 1], [], []>} : vector<8x32xf32>, vector<32x128xf32>, vector<8x128xf32> -> vector<8x128xf32>
    %298 = arith.addf %296, %297 : vector<8x128xf32>
    %299 = math.tanh %298 : vector<8x128xf32>
    %300 = arith.negf %298 : vector<8x128xf32>
    %301 = math.exp %300 : vector<8x128xf32>
    %cst_48 = arith.constant 1.000000e+00 : f32
    %302 = vector.broadcast %cst_48 : f32 to vector<8x128xf32>
    %303 = arith.addf %302, %301 : vector<8x128xf32>
    %304 = arith.divf %302, %303 : vector<8x128xf32>
    %305 = arith.select %17, %299, %304 : vector<8x128xi1>, vector<8x128xf32>
    %306 = vector.extract_strided_slice %305 {offsets = [0, 0], sizes = [8, 32], strides = [1, 1]} : vector<8x128xf32> to vector<8x32xf32>
    %307 = vector.extract_strided_slice %305 {offsets = [0, 32], sizes = [8, 32], strides = [1, 1]} : vector<8x128xf32> to vector<8x32xf32>
    %308 = vector.extract_strided_slice %305 {offsets = [0, 64], sizes = [8, 32], strides = [1, 1]} : vector<8x128xf32> to vector<8x32xf32>
    %309 = vector.extract_strided_slice %305 {offsets = [0, 96], sizes = [8, 32], strides = [1, 1]} : vector<8x128xf32> to vector<8x32xf32>
    %310 = arith.mulf %307, %271 : vector<8x32xf32>
    %311 = arith.mulf %306, %308 : vector<8x32xf32>
    %312 = arith.addf %310, %311 : vector<8x32xf32>
    %313 = math.tanh %312 : vector<8x32xf32>
    %314 = arith.mulf %309, %313 : vector<8x32xf32>
    %cst_49 = arith.constant dense<0.000000e+00> : vector<8x128xf32>
    %315 = tpu.matmul %314, %10, %cst_49 {dimension_numbers = #tpu.dot_dimension_numbers<[1], [0], [0], [1], [0, 0, 1, 1], [], []>} : vector<8x32xf32>, vector<32x128xf32>, vector<8x128xf32> -> vector<8x128xf32>
    %316 = vector.broadcast %11 : vector<1x128xf32> to vector<8x128xf32>
    %317 = arith.addf %315, %316 : vector<8x128xf32>
    %cst_50 = arith.constant dense<0.000000e+00> : vector<8x128xf32>
    %318 = tpu.matmul %294, %9, %cst_50 {dimension_numbers = #tpu.dot_dimension_numbers<[1], [0], [0], [1], [0, 0, 1, 1], [], []>} : vector<8x32xf32>, vector<32x128xf32>, vector<8x128xf32> -> vector<8x128xf32>
    %319 = arith.addf %317, %318 : vector<8x128xf32>
    %320 = math.tanh %319 : vector<8x128xf32>
    %321 = arith.negf %319 : vector<8x128xf32>
    %322 = math.exp %321 : vector<8x128xf32>
    %cst_51 = arith.constant 1.000000e+00 : f32
    %323 = vector.broadcast %cst_51 : f32 to vector<8x128xf32>
    %324 = arith.addf %323, %322 : vector<8x128xf32>
    %325 = arith.divf %323, %324 : vector<8x128xf32>
    %326 = arith.select %17, %320, %325 : vector<8x128xi1>, vector<8x128xf32>
    %327 = vector.extract_strided_slice %326 {offsets = [0, 0], sizes = [8, 32], strides = [1, 1]} : vector<8x128xf32> to vector<8x32xf32>
    %328 = vector.extract_strided_slice %326 {offsets = [0, 32], sizes = [8, 32], strides = [1, 1]} : vector<8x128xf32> to vector<8x32xf32>
    %329 = vector.extract_strided_slice %326 {offsets = [0, 64], sizes = [8, 32], strides = [1, 1]} : vector<8x128xf32> to vector<8x32xf32>
    %330 = vector.extract_strided_slice %326 {offsets = [0, 96], sizes = [8, 32], strides = [1, 1]} : vector<8x128xf32> to vector<8x32xf32>
    %331 = arith.mulf %328, %292 : vector<8x32xf32>
    %332 = arith.mulf %327, %329 : vector<8x32xf32>
    %333 = arith.addf %331, %332 : vector<8x32xf32>
    %334 = math.tanh %333 : vector<8x32xf32>
    %335 = arith.mulf %330, %334 : vector<8x32xf32>
    %c0_52 = arith.constant 0 : index
    %c0_53 = arith.constant 0 : index
    %336 = vector.load %arg7[%c0_52, %c0_53] : memref<32x128xf32, #tpu.memory_space<vmem>>, vector<32x128xf32>
    %cst_54 = arith.constant dense<0.000000e+00> : vector<8x128xf32>
    %337 = tpu.matmul %335, %336, %cst_54 {dimension_numbers = #tpu.dot_dimension_numbers<[1], [0], [0], [1], [0, 0, 1, 1], [], []>} : vector<8x32xf32>, vector<32x128xf32>, vector<8x128xf32> -> vector<8x128xf32>
    %c0_55 = arith.constant 0 : index
    %c0_56 = arith.constant 0 : index
    %338 = vector.load %arg8[%c0_55, %c0_56] : memref<1x128xf32, #tpu.memory_space<vmem>>, vector<1x128xf32>
    %339 = vector.broadcast %338 : vector<1x128xf32> to vector<8x128xf32>
    %340 = arith.addf %337, %339 : vector<8x128xf32>
    %c0_57 = arith.constant 0 : index
    %c0_58 = arith.constant 0 : index
    %341 = vector.load %arg9[%c0_57, %c0_58] : memref<8x128xf32, #tpu.memory_space<vmem>>, vector<8x128xf32>
    tpu.vector_store %arg9[%c0_57, %c0_58], %340 {strides = array<i32>} : memref<8x128xf32, #tpu.memory_space<vmem>>, vector<8x128xf32>,
    return
  }
}

</mosaic_0001>

<bundles_post_ra>
// kernel: lstm_model_pallas.1
= control target key start
LH: loop header
LB: loop body
LE: loop exit
PB: predicated region body
PF: predicated region fallthrough
CT: control target
= control target key end

     0   :  { %14 = vsyncpa [#allocation3], 0  ;;  %s2947_s30 = smov [#allocation2]   ;;  %s3575_s0 = inlined_call_operand.vmem [shape: f32[8,8,16], index: 0, kind: input, shape index: {}]   ;;  %s3576_s1 = inlined_call_operand.vmem [shape: f32[16,128], index: 1, kind: input, shape index: {}]   ;;  %s3577_s2 = inlined_call_operand.vmem [shape: f32[32,128], index: 2, kind: input, shape index: {}]   ;;  %s3578_s3 = inlined_call_operand.vmem [shape: f32[1,128], index: 3, kind: input, shape index: {}]   ;;  %s3579_s4 = inlined_call_operand.vmem [shape: f32[32,128], index: 4, kind: input, shape index: {}]   ;;  %s3580_s5 = inlined_call_operand.vmem [shape: f32[32,128], index: 5, kind: input, shape index: {}]   ;;  %s3581_s6 = inlined_call_operand.vmem [shape: f32[1,128], index: 6, kind: input, shape index: {}]   ;;  %s3582_s7 = inlined_call_operand.hbm [shape: f32[32,128], index: 7, kind: input, shape index: {}]   ;;  %s3583_s8 = inlined_call_operand.vmem [shape: f32[1,128], index: 8, kind: input, shape index: {}]   ;;  %s3584_s9 = inlined_call_operand.vmem [shape: f32[8,128], index: 9, kind: output, shape index: {}]  }
   0x1   :  { %s34_s10 = sshll.u32 %s2947_s30, 4  ;;  %s35_s10 = int_to_ptr.vmem [resolvable:$true] %s34_s10 }
   0x2   :  { %s2933_s11 = scalar_lea.vmem %s35_s10, 512  ;;  %p2938_p1 = scmp.lt.s32.totalorder %s35_s10, %s35_s10 }
   0x3   :  { %p2934_p0 = scmp.ne.s32.totalorder %s35_s10, %s2933_s11  ;;  %p2939_p2 = scmp.lt.s32.totalorder %s2933_s11, %s2933_s11 }
   0x5   :  { %p2940_p3 = por %p2939_p2, %p2938_p1 }
   0x7   :  { %p2941_p4 = pnand %p2940_p3, %p2934_p0 }
   0x9   :  { %2944 = shalt.err (!%p2941_p4)
}
   0xa   :  { %s2948_s12 = smov 128   ;;  %s2949_s13 = smov 8  }
   0xb   :  { %40 = dma.hbm_to_vmem [thread:$0]  %s3582_s7, 512, %s35_s10, [#allocation3], %s2948_s12, %s2948_s12, %s2949_s13  }
   0xc   :  { %2945 = dma.done.wait [#allocation3], 512  }
   0xd   :  { %2946 = vsyncadd [#allocation3], 4294966784  ;;  %vm63_vm0 = vcmask 130048   ;;  %v47_v0 = vld [vmem:[%s3576_s1 + $0x8] sm:$0xff]  ;;  %v46_v1 = vld [vmem:[%s3576_s1] sm:$0xff]  ;;  %v206_v11 = vlaneseq  ;;  %s2950_s24 = smov 64  }
   0xe   :  { %v49_v2 = vld [vmem:[%s3575_s0] sm:$0xff]  ;;  %2510 = vmatprep.subr.mxu0 %v47_v0  ;;  %v50_v3 = vld [vmem:[%s3575_s0 + $0x8] sm:$0xff]  ;;  %v3040_v19 = vld [vmem:[%s3579_s4 + $0x18] sm:$0xff]  ;;  %v2951_v20 = vmov 0.0   ;;  %vm2952_vm4 = vmmov 0   ;;  %s2953_s12 = smov 96  }
   0xf   :  { %2514 = vmatprep.mubr.msk.f32.mxu0 %vm63_vm0, %v49_v2  ;;  %2511 = vmatpush3.msra.mxu0 %v47_v0  ;;  %v3027_v5 = vld [vmem:[%s3578_s3] ss:$0 sm:$0xff]  ;;  %v207_v12 = vand.u32 127, %v206_v11  ;;  %v3046_v21 = vld [vmem:[%s3579_s4 + $0x10] sm:$0xff]  ;;  %v3056_v22 = vld [vmem:[%s3579_s4 + $0x8] sm:$0xff]  ;;  %s2954_s13 = smov 32  }
  0x10   :  { %2512 = vmatprep.subr.mxu0 %v46_v1  ;;  %2526 = vmatprep.subr.mxu1 %v2951_v20  ;;  %v3065_v23 = vld [vmem:[%s3579_s4] sm:$0xff]  ;;  %vm239_vm5 = vcmask 261120   ;;  %v3083_v27 = vld [vmem:[%s3577_s2 + $0x18] sm:$0xff]  ;;  %v3089_v29 = vld [vmem:[%s3577_s2 + $0x10] sm:$0xff] }
  0x11   :  { %2513 = vmatpush3.msra.mxu0 %v46_v1  ;;  %vm208_vm1 = vcmp.ge.s32.totalorder %v207_v12, 64  ;;  %vm209_vm2 = vcmp.lt.s32.totalorder %v207_v12, 96  ;;  %2534 = vmatprep.mubr.msk.f32.mxu1 %vm2952_vm4, %v2951_v20  ;;  %v3098_v30 = vld [vmem:[%s3577_s2 + $0x8] sm:$0xff]  ;;  %v3105_v31 = vld [vmem:[%s3577_s2] sm:$0xff]  ;;  %v3135_v57 = vld [vmem:[%s3580_s5 + $0x18] sm:$0xff] }
  0x12   :  { %2515 = vmatmul.mubr.msk.f32.vlgmr.msra.gmra.mxu0 %vm63_vm0, %v50_v3  ;;  %vm3030_vm3 = vmand %vm208_vm1, %vm209_vm2  ;;  %2527 = vmatpush3.msra.mxu1 %v3040_v19  ;;  %v3117_v32 = vld [vmem:[%s3581_s6] ss:$0 sm:$0xff]  ;;  %v3140_v58 = vld [vmem:[%s3580_s5 + $0x10] sm:$0xff] }
  0x13   :  { %2548 = vmatprep.subr.mxu0 %v2951_v20  ;;  %2528 = vmatprep.subr.mxu1 %v2951_v20  ;;  %v3147_v60 = vld [vmem:[%s3580_s5 + $0x8] sm:$0xff]  ;;  %v3155_v61 = vld [vmem:[%s3580_s5] sm:$0xff]  ;;  %v51_v2 = vld [vmem:[%s3575_s0 + $0x10] sm:$0xff] }
  0x14   :  { %2549 = vmatpush3.msra.mxu0 %v3040_v19  ;;  %2529 = vmatpush3.msra.mxu1 %v3046_v21  ;;  %v52_v3 = vld [vmem:[%s3575_s0 + $0x18] sm:$0xff]  ;;  %v2243_v13 = vld [vmem:[#allocation2] sm:$0xff] }
  0x15   :  { %2550 = vmatprep.subr.mxu0 %v2951_v20  ;;  %2530 = vmatprep.subr.mxu1 %v2951_v20 }
  0x16   :  { %2551 = vmatpush3.msra.mxu0 %v3046_v21  ;;  %2531 = vmatpush3.msra.mxu1 %v3056_v22 }
  0x17   :  { %2552 = vmatprep.subr.mxu0 %v2951_v20  ;;  %2532 = vmatprep.subr.mxu1 %v2951_v20 }
  0x18   :  { %2553 = vmatpush3.msra.mxu0 %v3056_v22  ;;  %2533 = vmatpush3.msra.mxu1 %v3065_v23 }
  0x19   :  { %2554 = vmatprep.subr.mxu0 %v2951_v20  ;;  %2537 = vmatprep.subr.mxu1 %v2951_v20 }
  0x1a   :  { %2555 = vmatpush3.msra.mxu0 %v3065_v23  ;;  %2517 = vmatprep.mubr.msk.f32.mxu0 %vm63_vm0, %v51_v2 }
  0x1b   :  { %2570 = vmatprep.subr.mxu0 %v2951_v20  ;;  %2518 = vmatmul.mubr.msk.f32.gmra.mxu0 %vm63_vm0, %v52_v3 }
  0xd2   :  { %v3022_v4 = vpop.f32.mrf.mxu0 }
  0xd3   :  { %v160_v37 = vadd.f32 %v3022_v4, %v3027_v5  ;;  %v53_v4 = vld [vmem:[%s3575_s0 + $0x20] sm:$0xff] }
  0xd4   :  { %v154_v6 = vpop.f32.mrf.mxu0  ;;  %2520 = vmatprep.mubr.msk.f32.mxu0 %vm63_vm0, %v53_v4 }
  0xd5   :  { %v155_v7 = vadd.f32 %v3027_v5, %v154_v6 }
  0xd7   :  { %v2344_v8 = vmul.f32 -1.442695, %v155_v7 }
  0xd9   :  { %2787 = vpow2.f32 %v2344_v8  ;;  %v55_v8 = vld [vmem:[%s3575_s0 + $0x30] sm:$0xff] }
  0xda   :  { %2789 = vtanh.f32 %v155_v7  ;;  %v54_v7 = vld [vmem:[%s3575_s0 + $0x28] sm:$0xff] }
  0xdb   :  { %2521 = vmatmul.mubr.msk.f32.gmra.mxu0 %vm63_vm0, %v54_v7 }
  0xdc   :  { %2523 = vmatprep.mubr.msk.f32.mxu0 %vm63_vm0, %v55_v8 }
  0xe6   :  { %v2788_v9 = vpop.eup %2787 }
  0xe7   :  { %v215_v10 = vadd.f32 1.0, %v2788_v9  ;;  %v2790_v14 = vpop.eup %2789  ;;  %v56_v9 = vld [vmem:[%s3575_s0 + $0x38] sm:$0xff] }
  0xe8   :  { %2524 = vmatmul.mubr.msk.f32.gmra.mxu0 %vm63_vm0, %v56_v9 }
  0xe9   :  { %2791 = vrcp.f32 %v215_v10  ;;  %2556 = vmatprep.mubr.msk.f32.mxu0 %vm2952_vm4, %v2951_v20 }
  0xf6   :  { %v2792_v15 = vpop.eup %2791 }
  0xf7   :  { %v218_v16 = vsel %vm3030_vm3, %v2790_v14, %v2792_v15 }
  0xf8   :  { %220 = vrot.lane.b32.xlu0 %v218_v16, %s2950_s24 }
 0x16a   :  { %v221_v17 = vpop.permute.xlu0 %220 }
 0x16b   :  { %v223_v18 = vmul.f32 %v221_v17, %v218_v16 }
 0x16d   :  { %2793 = vtanh.f32 %v223_v18 }
 0x17a   :  { %v2794_v24 = vpop.eup %2793 }
 0x17b   :  { %226 = vrot.lane.b32.xlu0 %v2794_v24, %s2953_s12 }
 0x17f   :  { %411 = vrot.lane.b32.xlu0 %v223_v18, %s2954_s13  ;;  %v3226_v18 = vpop.f32.mrf.mxu0 }
 0x181   :  { %v164_v24 = vpop.f32.mrf.mxu0 }
 0x1ed   :  { %v227_v25 = vpop.permute.xlu0 %226 }
 0x1ee   :  { %v229_v26 = vmul.f32 %v227_v25, %v218_v16  ;;  %v3228_v25 = vpop.f32.mrf.mxu0 }
 0x1f0   :  { %237 = vrot.lane.b32.xlu1 %v229_v26, %s2954_s13  ;;  %v3230_v26 = vpop.f32.mrf.mxu0 }
 0x1f1   :  { %v412_v52 = vpop.permute.xlu0 %411 }
 0x262   :  { %v238_v28 = vpop.permute.xlu1 %237 }
 0x263   :  { %2535 = vmatmul.mubr.msk.f32.vlgmr.msra.gmra.mxu1 %vm239_vm5, %v238_v28 }
 0x264   :  { %2538 = vmatpush3.msra.mxu1 %v3083_v27  ;;  %2545 = vmatprep.mubr.msk.f32.mxu1 %vm2952_vm4, %v2951_v20 }
 0x265   :  { %2539 = vmatprep.subr.mxu1 %v2951_v20 }
 0x266   :  { %2540 = vmatpush3.msra.mxu1 %v3089_v29 }
 0x267   :  { %2541 = vmatprep.subr.mxu1 %v2951_v20 }
 0x268   :  { %2542 = vmatpush3.msra.mxu1 %v3098_v30 }
 0x269   :  { %2543 = vmatprep.subr.mxu1 %v2951_v20 }
 0x26a   :  { %2544 = vmatpush3.msra.mxu1 %v3105_v31 }
 0x26b   :  { %2546 = vmatmul.mubr.msk.f32.vlgmr.msra.gmra.mxu1 %vm239_vm5, %v238_v28  ;;  %2559 = vmatprep.subr.mxu1 %v2951_v20  ;;  %v3232_v28 = vpop.f32.mrf.mxu0 }
 0x26c   :  { %2567 = vmatprep.mubr.msk.f32.mxu1 %vm2952_vm4, %v2951_v20  ;;  %2560 = vmatpush3.msra.mxu1 %v3135_v57 }
 0x26d   :  { %2561 = vmatprep.subr.mxu1 %v2951_v20 }
 0x26e   :  { %2562 = vmatpush3.msra.mxu1 %v3140_v58 }
 0x26f   :  { %2563 = vmatprep.subr.mxu1 %v2951_v20 }
 0x270   :  { %2564 = vmatpush3.msra.mxu1 %v3147_v60 }
 0x271   :  { %2565 = vmatprep.subr.mxu1 %v2951_v20 }
 0x272   :  { %2566 = vmatpush3.msra.mxu1 %v3155_v61 }
 0x273   :  { %2581 = vmatprep.subr.mxu1 %v2951_v20 }
 0x323   :  { %v308_v33 = vpop.f32.mrf.mxu1 }
 0x324   :  { %v309_v34 = vadd.f32 %v3117_v32, %v308_v33  ;;  %v3234_v33 = vpop.f32.mrf.mxu0 }
 0x325   :  { %v2536_v35 = vpop.f32.mrf.mxu1 }
 0x326   :  { %v2347_v36 = vmul.f32 -1.442695, %v309_v34 }
 0x328   :  { %2795 = vpow2.f32 %v2347_v36 }
 0x32b   :  { %v397_v38 = vpop.f32.mrf.mxu1 }
 0x32c   :  { %v401_v39 = vadd.f32 %v397_v38, %v160_v37 }
 0x32d   :  { %v2547_v40 = vpop.f32.mrf.mxu1 }
 0x32e   :  { %v2349_v41 = vmul.f32 -1.442695, %v401_v39 }
 0x330   :  { %2797 = vpow2.f32 %v2349_v41 }
 0x331   :  { %2799 = vtanh.f32 %v309_v34 }
 0x335   :  { %v2796_v42 = vpop.eup %2795 }
 0x336   :  { %v316_v43 = vadd.f32 1.0, %v2796_v42 }
 0x338   :  { %2801 = vrcp.f32 %v316_v43 }
 0x339   :  { %2803 = vtanh.f32 %v401_v39  ;;  %v165_v39 = vadd.f32 %v3027_v5, %v164_v24 }
 0x33d   :  { %v2798_v44 = vpop.eup %2797 }
 0x33e   :  { %v406_v45 = vadd.f32 1.0, %v2798_v44  ;;  %v2800_v46 = vpop.eup %2799 }
 0x340   :  { %2805 = vrcp.f32 %v406_v45 }
 0x345   :  { %v2802_v47 = vpop.eup %2801 }
 0x346   :  { %v319_v48 = vsel %vm3030_vm3, %v2800_v46, %v2802_v47  ;;  %v2804_v49 = vpop.eup %2803 }
 0x347   :  { %321 = vrot.lane.b32.xlu0 %v319_v48, %s2950_s24 }
 0x34d   :  { %v2806_v50 = vpop.eup %2805 }
 0x34e   :  { %v409_v51 = vsel %vm3030_vm3, %v2804_v49, %v2806_v50 }
 0x34f   :  { %416 = vrot.lane.b32.xlu1 %v409_v51, %s2950_s24  ;;  %v414_v62 = vmul.f32 %v412_v52, %v409_v51 }
 0x3b9   :  { %v322_v53 = vpop.permute.xlu0 %321 }
 0x3ba   :  { %v3128_v54 = vmul.f32 %v322_v53, %v319_v48 }
 0x3bc   :  { %2807 = vtanh.f32 %v3128_v54 }
 0x3c1   :  { %v417_v55 = vpop.permute.xlu1 %416 }
 0x3c2   :  { %v419_v56 = vmul.f32 %v417_v55, %v409_v51 }
 0x3c4   :  { %421 = vrot.lane.b32.xlu1 %v419_v56, %s2954_s13 }
 0x3c9   :  { %v2808_v59 = vpop.eup %2807 }
 0x3ca   :  { %327 = vrot.lane.b32.xlu0 %v2808_v59, %s2953_s12 }
 0x436   :  { %v422_v63 = vpop.permute.xlu1 %421 }
 0x437   :  { %v3161_v0 = vadd.f32 %v422_v63, %v414_v62 }
 0x439   :  { %2809 = vtanh.f32 %v3161_v0 }
 0x43c   :  { %v328_v1 = vpop.permute.xlu0 %327 }
 0x43d   :  { %v330_v6 = vmul.f32 %v328_v1, %v319_v48 }
 0x43f   :  { %507 = vrot.lane.b32.xlu0 %v330_v6, %s2954_s13 }
 0x446   :  { %v2810_v10 = vpop.eup %2809 }
 0x447   :  { %427 = vrot.lane.b32.xlu1 %v2810_v10, %s2950_s24 }
 0x4b1   :  { %v508_v11 = vpop.permute.xlu0 %507 }
 0x4b2   :  { %2568 = vmatmul.mubr.msk.f32.vlgmr.msra.gmra.mxu1 %vm239_vm5, %v508_v11 }
 0x4b3   :  { %2582 = vmatpush3.msra.mxu1 %v3040_v19  ;;  %2589 = vmatprep.mubr.msk.f32.mxu1 %vm2952_vm4, %v2951_v20 }
 0x4b4   :  { %2583 = vmatprep.subr.mxu1 %v2951_v20 }
 0x4b5   :  { %2584 = vmatpush3.msra.mxu1 %v3046_v21 }
 0x4b6   :  { %2585 = vmatprep.subr.mxu1 %v2951_v20 }
 0x4b7   :  { %2586 = vmatpush3.msra.mxu1 %v3056_v22 }
 0x4b8   :  { %2587 = vmatprep.subr.mxu1 %v2951_v20 }
 0x4b9   :  { %v428_v12 = vpop.permute.xlu1 %427  ;;  %2588 = vmatpush3.msra.mxu1 %v3065_v23 }
 0x4ba   :  { %v430_v14 = vmul.f32 %v428_v12, %v409_v51  ;;  %2603 = vmatprep.subr.mxu1 %v2951_v20 }
 0x4bc   :  { %432 = vrot.lane.b32.xlu1 %v430_v14, %s2954_s13 }
 0x52e   :  { %v433_v15 = vpop.permute.xlu1 %432 }
 0x52f   :  { %2557 = vmatmul.mubr.msk.f32.vlgmr.msra.gmra.mxu0 %vm239_vm5, %v433_v15 }
 0x530   :  { %2571 = vmatpush3.msra.mxu0 %v3083_v27  ;;  %2578 = vmatprep.mubr.msk.f32.mxu0 %vm2952_vm4, %v2951_v20 }
 0x531   :  { %2572 = vmatprep.subr.mxu0 %v2951_v20 }
 0x532   :  { %2573 = vmatpush3.msra.mxu0 %v3089_v29 }
 0x533   :  { %2574 = vmatprep.subr.mxu0 %v2951_v20 }
 0x534   :  { %2575 = vmatpush3.msra.mxu0 %v3098_v30 }
 0x535   :  { %2576 = vmatprep.subr.mxu0 %v2951_v20 }
 0x536   :  { %2577 = vmatpush3.msra.mxu0 %v3105_v31 }
 0x537   :  { %2579 = vmatmul.mubr.msk.f32.vlgmr.msra.gmra.mxu0 %vm239_vm5, %v433_v15  ;;  %2592 = vmatprep.subr.mxu0 %v2951_v20 }
 0x538   :  { %2593 = vmatpush3.msra.mxu0 %v3135_v57  ;;  %2600 = vmatprep.mubr.msk.f32.mxu0 %vm2952_vm4, %v2951_v20 }
 0x539   :  { %2594 = vmatprep.subr.mxu0 %v2951_v20 }
 0x53a   :  { %2595 = vmatpush3.msra.mxu0 %v3140_v58 }
 0x53b   :  { %2596 = vmatprep.subr.mxu0 %v2951_v20 }
 0x53c   :  { %2597 = vmatpush3.msra.mxu0 %v3147_v60 }
 0x53d   :  { %2598 = vmatprep.subr.mxu0 %v2951_v20 }
 0x53e   :  { %2599 = vmatpush3.msra.mxu0 %v3155_v61 }
 0x53f   :  { %2614 = vmatprep.subr.mxu0 %v2951_v20 }
 0x572   :  { %v577_v16 = vpop.f32.mrf.mxu1 }
 0x574   :  { %v2569_v17 = vpop.f32.mrf.mxu1 }
 0x5ef   :  { %v502_v34 = vpop.f32.mrf.mxu0 }
 0x5f0   :  { %v503_v35 = vadd.f32 %v3117_v32, %v502_v34 }
 0x5f1   :  { %v2558_v36 = vpop.f32.mrf.mxu0 }
 0x5f2   :  { %v581_v37 = vadd.f32 %v577_v16, %v503_v35  ;;  %v170_v36 = vadd.f32 %v3226_v18, %v3027_v5 }
 0x5f4   :  { %v2352_v38 = vmul.f32 -1.442695, %v581_v37 }
 0x5f6   :  { %2811 = vpow2.f32 %v2352_v38 }
 0x5f7   :  { %v677_v40 = vpop.f32.mrf.mxu0 }
 0x5f8   :  { %v681_v41 = vadd.f32 %v677_v40, %v165_v39 }
 0x5f9   :  { %v2580_v42 = vpop.f32.mrf.mxu0 }
 0x5fa   :  { %v2354_v43 = vmul.f32 -1.442695, %v681_v41 }
 0x5fc   :  { %2813 = vpow2.f32 %v2354_v43 }
 0x5fd   :  { %2815 = vtanh.f32 %v581_v37 }
 0x603   :  { %v2812_v44 = vpop.eup %2811 }
 0x604   :  { %v586_v45 = vadd.f32 1.0, %v2812_v44 }
 0x606   :  { %2817 = vrcp.f32 %v586_v45 }
 0x607   :  { %2819 = vtanh.f32 %v681_v41 }
 0x609   :  { %v2814_v46 = vpop.eup %2813 }
 0x60a   :  { %v686_v47 = vadd.f32 1.0, %v2814_v46  ;;  %v2816_v48 = vpop.eup %2815 }
 0x60c   :  { %2821 = vrcp.f32 %v686_v47 }
 0x613   :  { %v2818_v49 = vpop.eup %2817 }
 0x614   :  { %v589_v50 = vsel %vm3030_vm3, %v2816_v48, %v2818_v49  ;;  %v2820_v51 = vpop.eup %2819 }
 0x615   :  { %596 = vrot.lane.b32.xlu0 %v589_v50, %s2950_s24 }
 0x619   :  { %v2822_v52 = vpop.eup %2821  ;;  %591 = vrot.lane.b32.xlu0 %v3128_v54, %s2954_s13 }
 0x61a   :  { %v689_v53 = vsel %vm3030_vm3, %v2820_v51, %v2822_v52 }
 0x61b   :  { %692 = vrot.lane.b32.xlu1 %v689_v53, %s2950_s24  ;;  %v690_v63 = vmul.f32 %v689_v53, %v3161_v0 }
 0x687   :  { %v597_v59 = vpop.permute.xlu0 %596 }
 0x688   :  { %v599_v62 = vmul.f32 %v597_v59, %v589_v50 }
 0x68b   :  { %v592_v1 = vpop.permute.xlu0 %591 }
 0x68c   :  { %v594_v54 = vmul.f32 %v592_v1, %v589_v50 }
 0x68d   :  { %v693_v55 = vpop.permute.xlu1 %692 }
 0x68e   :  { %v695_v56 = vmul.f32 %v693_v55, %v689_v53 }
 0x690   :  { %697 = vrot.lane.b32.xlu1 %v695_v56, %s2954_s13 }
 0x694   :  { %601 = vrot.lane.b32.xlu1 %v599_v62, %s2954_s13 }
 0x702   :  { %v698_v2 = vpop.permute.xlu1 %697 }
 0x703   :  { %v3249_v3 = vadd.f32 %v698_v2, %v690_v63 }
 0x705   :  { %2823 = vtanh.f32 %v3249_v3 }
 0x706   :  { %v602_v4 = vpop.permute.xlu1 %601 }
 0x707   :  { %v3252_v6 = vadd.f32 %v602_v4, %v594_v54 }
 0x709   :  { %2825 = vtanh.f32 %v3252_v6 }
 0x712   :  { %v2824_v7 = vpop.eup %2823 }
 0x713   :  { %703 = vrot.lane.b32.xlu0 %v2824_v7, %s2950_s24 }
 0x716   :  { %v2826_v8 = vpop.eup %2825 }
 0x717   :  { %607 = vrot.lane.b32.xlu1 %v2826_v8, %s2950_s24 }
 0x785   :  { %v704_v9 = vpop.permute.xlu0 %703 }
 0x786   :  { %v706_v0 = vmul.f32 %v704_v9, %v689_v53 }
 0x788   :  { %708 = vrot.lane.b32.xlu0 %v706_v0, %s2954_s13 }
 0x789   :  { %v608_v10 = vpop.permute.xlu1 %607 }
 0x78a   :  { %v610_v11 = vmul.f32 %v608_v10, %v589_v50 }
 0x78c   :  { %783 = vrot.lane.b32.xlu1 %v610_v11, %s2954_s13 }
 0x7fa   :  { %v709_v12 = vpop.permute.xlu0 %708 }
 0x7fb   :  { %2590 = vmatmul.mubr.msk.f32.vlgmr.msra.gmra.mxu1 %vm239_vm5, %v709_v12 }
 0x7fc   :  { %2604 = vmatpush3.msra.mxu1 %v3083_v27  ;;  %2611 = vmatprep.mubr.msk.f32.mxu1 %vm2952_vm4, %v2951_v20 }
 0x7fd   :  { %2605 = vmatprep.subr.mxu1 %v2951_v20 }
 0x7fe   :  { %2606 = vmatpush3.msra.mxu1 %v3089_v29  ;;  %v784_v14 = vpop.permute.xlu1 %783 }
 0x7ff   :  { %2607 = vmatprep.subr.mxu1 %v2951_v20  ;;  %2601 = vmatmul.mubr.msk.f32.vlgmr.msra.gmra.mxu0 %vm239_vm5, %v784_v14 }
 0x800   :  { %2608 = vmatpush3.msra.mxu1 %v3098_v30  ;;  %2615 = vmatpush3.msra.mxu0 %v3040_v19 }
 0x801   :  { %2609 = vmatprep.subr.mxu1 %v2951_v20  ;;  %2616 = vmatprep.subr.mxu0 %v2951_v20 }
 0x802   :  { %2610 = vmatpush3.msra.mxu1 %v3105_v31  ;;  %2617 = vmatpush3.msra.mxu0 %v3046_v21 }
 0x803   :  { %2612 = vmatmul.mubr.msk.f32.vlgmr.msra.gmra.mxu1 %vm239_vm5, %v709_v12  ;;  %2625 = vmatprep.subr.mxu1 %v2951_v20 }
 0x804   :  { %2626 = vmatpush3.msra.mxu1 %v3135_v57  ;;  %2618 = vmatprep.subr.mxu0 %v2951_v20 }
 0x805   :  { %2627 = vmatprep.subr.mxu1 %v2951_v20  ;;  %2619 = vmatpush3.msra.mxu0 %v3056_v22 }
 0x806   :  { %2628 = vmatpush3.msra.mxu1 %v3140_v58  ;;  %2633 = vmatprep.mubr.msk.f32.mxu1 %vm2952_vm4, %v2951_v20 }
 0x807   :  { %2629 = vmatprep.subr.mxu1 %v2951_v20  ;;  %2620 = vmatprep.subr.mxu0 %v2951_v20 }
 0x808   :  { %2630 = vmatpush3.msra.mxu1 %v3147_v60  ;;  %2621 = vmatpush3.msra.mxu0 %v3065_v23 }
 0x809   :  { %2631 = vmatprep.subr.mxu1 %v2951_v20  ;;  %2622 = vmatprep.mubr.msk.f32.mxu0 %vm2952_vm4, %v2951_v20 }
 0x80a   :  { %2632 = vmatpush3.msra.mxu1 %v3155_v61  ;;  %2636 = vmatprep.subr.mxu0 %v2951_v20 }
 0x80b   :  { %2647 = vmatprep.subr.mxu1 %v2951_v20 }
 0x8bb   :  { %v778_v15 = vpop.f32.mrf.mxu1 }
 0x8bc   :  { %v779_v17 = vadd.f32 %v3117_v32, %v778_v15 }
 0x8bd   :  { %v2591_v16 = vpop.f32.mrf.mxu1 }
 0x8bf   :  { %v853_v24 = vpop.f32.mrf.mxu0 }
 0x8c0   :  { %v857_v34 = vadd.f32 %v853_v24, %v779_v17  ;;  %v175_v24 = vadd.f32 %v3027_v5, %v3230_v26 }
 0x8c1   :  { %v2602_v35 = vpop.f32.mrf.mxu0 }
 0x8c2   :  { %v2357_v37 = vmul.f32 -1.442695, %v857_v34 }
 0x8c3   :  { %v949_v38 = vpop.f32.mrf.mxu1 }
 0x8c4   :  { %2827 = vpow2.f32 %v2357_v37  ;;  %v953_v39 = vadd.f32 %v949_v38, %v170_v36 }
 0x8c5   :  { %v2613_v40 = vpop.f32.mrf.mxu1 }
 0x8c6   :  { %v2359_v41 = vmul.f32 -1.442695, %v953_v39 }
 0x8c8   :  { %2829 = vpow2.f32 %v2359_v41 }
 0x8c9   :  { %2831 = vtanh.f32 %v857_v34 }
 0x8d1   :  { %v2828_v42 = vpop.eup %2827 }
 0x8d2   :  { %v862_v43 = vadd.f32 1.0, %v2828_v42 }
 0x8d4   :  { %2833 = vrcp.f32 %v862_v43 }
 0x8d5   :  { %v2830_v44 = vpop.eup %2829  ;;  %2835 = vtanh.f32 %v953_v39 }
 0x8d6   :  { %v958_v45 = vadd.f32 1.0, %v2830_v44  ;;  %v2832_v46 = vpop.eup %2831 }
 0x8d8   :  { %2837 = vrcp.f32 %v958_v45 }
 0x8e1   :  { %v2834_v47 = vpop.eup %2833 }
 0x8e2   :  { %v865_v18 = vsel %vm3030_vm3, %v2832_v46, %v2834_v47  ;;  %v2836_v48 = vpop.eup %2835 }
 0x8e3   :  { %868 = vrot.lane.b32.xlu1 %v865_v18, %s2950_s24  ;;  %v866_v56 = vmul.f32 %v865_v18, %v3252_v6 }
 0x8e5   :  { %v2838_v49 = vpop.eup %2837 }
 0x8e6   :  { %v961_v50 = vsel %vm3030_vm3, %v2836_v48, %v2838_v49 }
 0x8e7   :  { %964 = vrot.lane.b32.xlu0 %v961_v50, %s2950_s24  ;;  %v962_v63 = vmul.f32 %v961_v50, %v3249_v3 }
 0x955   :  { %v869_v51 = vpop.permute.xlu1 %868 }
 0x956   :  { %v871_v52 = vmul.f32 %v869_v51, %v865_v18 }
 0x958   :  { %873 = vrot.lane.b32.xlu1 %v871_v52, %s2954_s13 }
 0x959   :  { %v965_v53 = vpop.permute.xlu0 %964 }
 0x95a   :  { %v967_v55 = vmul.f32 %v965_v53, %v961_v50 }
 0x95c   :  { %969 = vrot.lane.b32.xlu0 %v967_v55, %s2954_s13 }
 0x9ca   :  { %v874_v59 = vpop.permute.xlu1 %873 }
 0x9cb   :  { %v3304_v62 = vadd.f32 %v874_v59, %v866_v56 }
 0x9cd   :  { %2839 = vtanh.f32 %v3304_v62 }
 0x9ce   :  { %v970_v1 = vpop.permute.xlu0 %969 }
 0x9cf   :  { %v3308_v2 = vadd.f32 %v970_v1, %v962_v63 }
 0x9d1   :  { %2841 = vtanh.f32 %v3308_v2 }
 0x9da   :  { %v2840_v54 = vpop.eup %2839 }
 0x9db   :  { %879 = vrot.lane.b32.xlu1 %v2840_v54, %s2950_s24 }
 0x9de   :  { %v2842_v4 = vpop.eup %2841 }
 0x9df   :  { %975 = vrot.lane.b32.xlu0 %v2842_v4, %s2950_s24 }
 0xa4d   :  { %v880_v7 = vpop.permute.xlu1 %879 }
 0xa4e   :  { %v882_v6 = vmul.f32 %v880_v7, %v865_v18 }
 0xa50   :  { %1055 = vrot.lane.b32.xlu1 %v882_v6, %s2954_s13 }
 0xa51   :  { %v976_v8 = vpop.permute.xlu0 %975 }
 0xa52   :  { %v978_v9 = vmul.f32 %v976_v8, %v961_v50 }
 0xa54   :  { %980 = vrot.lane.b32.xlu0 %v978_v9, %s2954_s13 }
 0xac2   :  { %v1056_v3 = vpop.permute.xlu1 %1055 }
 0xac3   :  { %2634 = vmatmul.mubr.msk.f32.vlgmr.msra.gmra.mxu1 %vm239_vm5, %v1056_v3 }
 0xac4   :  { %2648 = vmatpush3.msra.mxu1 %v3040_v19  ;;  %2655 = vmatprep.mubr.msk.f32.mxu1 %vm2952_vm4, %v2951_v20 }
 0xac5   :  { %2649 = vmatprep.subr.mxu1 %v2951_v20 }
 0xac6   :  { %v981_v0 = vpop.permute.xlu0 %980  ;;  %2650 = vmatpush3.msra.mxu1 %v3046_v21 }
 0xac7   :  { %2623 = vmatmul.mubr.msk.f32.vlgmr.msra.gmra.mxu0 %vm239_vm5, %v981_v0  ;;  %2651 = vmatprep.subr.mxu1 %v2951_v20 }
 0xac8   :  { %2637 = vmatpush3.msra.mxu0 %v3083_v27  ;;  %2644 = vmatprep.mubr.msk.f32.mxu0 %vm2952_vm4, %v2951_v20 }
 0xac9   :  { %2638 = vmatprep.subr.mxu0 %v2951_v20  ;;  %2652 = vmatpush3.msra.mxu1 %v3056_v22 }
 0xaca   :  { %2639 = vmatpush3.msra.mxu0 %v3089_v29  ;;  %2653 = vmatprep.subr.mxu1 %v2951_v20 }
 0xacb   :  { %2640 = vmatprep.subr.mxu0 %v2951_v20  ;;  %2654 = vmatpush3.msra.mxu1 %v3065_v23 }
 0xacc   :  { %2641 = vmatpush3.msra.mxu0 %v3098_v30  ;;  %2669 = vmatprep.subr.mxu1 %v2951_v20 }
 0xacd   :  { %2642 = vmatprep.subr.mxu0 %v2951_v20 }
 0xace   :  { %2643 = vmatpush3.msra.mxu0 %v3105_v31 }
 0xacf   :  { %2645 = vmatmul.mubr.msk.f32.vlgmr.msra.gmra.mxu0 %vm239_vm5, %v981_v0  ;;  %2658 = vmatprep.subr.mxu0 %v2951_v20 }
 0xad0   :  { %2659 = vmatpush3.msra.mxu0 %v3135_v57  ;;  %2666 = vmatprep.mubr.msk.f32.mxu0 %vm2952_vm4, %v2951_v20 }
 0xad1   :  { %2660 = vmatprep.subr.mxu0 %v2951_v20 }
 0xad2   :  { %2661 = vmatpush3.msra.mxu0 %v3140_v58 }
 0xad3   :  { %2662 = vmatprep.subr.mxu0 %v2951_v20 }
 0xad4   :  { %2663 = vmatpush3.msra.mxu0 %v3147_v60 }
 0xad5   :  { %2664 = vmatprep.subr.mxu0 %v2951_v20 }
 0xad6   :  { %2665 = vmatpush3.msra.mxu0 %v3155_v61 }
 0xad7   :  { %2680 = vmatprep.subr.mxu0 %v2951_v20 }
 0xb83   :  { %v1125_v10 = vpop.f32.mrf.mxu1 }
 0xb85   :  { %v2635_v11 = vpop.f32.mrf.mxu1 }
 0xb87   :  { %v1050_v12 = vpop.f32.mrf.mxu0 }
 0xb88   :  { %v1051_v14 = vadd.f32 %v3117_v32, %v1050_v12  ;;  %v180_v12 = vadd.f32 %v3228_v25, %v3027_v5 }
 0xb89   :  { %v2624_v15 = vpop.f32.mrf.mxu0 }
 0xb8a   :  { %v1129_v16 = vadd.f32 %v1125_v10, %v1051_v14 }
 0xb8c   :  { %v2362_v17 = vmul.f32 -1.442695, %v1129_v16 }
 0xb8e   :  { %2843 = vpow2.f32 %v2362_v17 }
 0xb8f   :  { %v1221_v34 = vpop.f32.mrf.mxu0 }
 0xb90   :  { %v1225_v35 = vadd.f32 %v1221_v34, %v175_v24 }
 0xb91   :  { %v2646_v36 = vpop.f32.mrf.mxu0 }
 0xb92   :  { %v2364_v37 = vmul.f32 -1.442695, %v1225_v35 }
 0xb94   :  { %2845 = vpow2.f32 %v2364_v37 }
 0xb95   :  { %2847 = vtanh.f32 %v1129_v16 }
 0xb9b   :  { %v2844_v38 = vpop.eup %2843 }
 0xb9c   :  { %v1134_v39 = vadd.f32 1.0, %v2844_v38 }
 0xb9e   :  { %2849 = vrcp.f32 %v1134_v39 }
 0xb9f   :  { %2851 = vtanh.f32 %v1225_v35 }
 0xba1   :  { %v2846_v40 = vpop.eup %2845 }
 0xba2   :  { %v1230_v41 = vadd.f32 1.0, %v2846_v40  ;;  %v2848_v42 = vpop.eup %2847 }
 0xba4   :  { %2853 = vrcp.f32 %v1230_v41 }
 0xbab   :  { %v2850_v43 = vpop.eup %2849 }
 0xbac   :  { %v1137_v44 = vsel %vm3030_vm3, %v2848_v42, %v2850_v43  ;;  %v2852_v26 = vpop.eup %2851 }
 0xbad   :  { %1140 = vrot.lane.b32.xlu1 %v1137_v44, %s2950_s24  ;;  %v1138_v50 = vmul.f32 %v1137_v44, %v3304_v62 }
 0xbb1   :  { %v2854_v45 = vpop.eup %2853 }
 0xbb2   :  { %v1233_v46 = vsel %vm3030_vm3, %v2852_v26, %v2854_v45 }
 0xbb3   :  { %1236 = vrot.lane.b32.xlu0 %v1233_v46, %s2950_s24  ;;  %v1234_v53 = vmul.f32 %v1233_v46, %v3308_v2 }
 0xc1f   :  { %v1141_v47 = vpop.permute.xlu1 %1140 }
 0xc20   :  { %v1143_v18 = vmul.f32 %v1141_v47, %v1137_v44 }
 0xc22   :  { %1145 = vrot.lane.b32.xlu1 %v1143_v18, %s2954_s13 }
 0xc25   :  { %v1237_v48 = vpop.permute.xlu0 %1236 }
 0xc26   :  { %v1239_v49 = vmul.f32 %v1237_v48, %v1233_v46 }
 0xc28   :  { %1241 = vrot.lane.b32.xlu0 %v1239_v49, %s2954_s13 }
 0xc94   :  { %v1146_v51 = vpop.permute.xlu1 %1145 }
 0xc95   :  { %v3360_v52 = vadd.f32 %v1146_v51, %v1138_v50 }
 0xc97   :  { %2855 = vtanh.f32 %v3360_v52 }
 0xc9a   :  { %v1242_v55 = vpop.permute.xlu0 %1241 }
 0xc9b   :  { %v3364_v56 = vadd.f32 %v1242_v55, %v1234_v53 }
 0xc9d   :  { %2857 = vtanh.f32 %v3364_v56 }
 0xca4   :  { %v2856_v59 = vpop.eup %2855 }
 0xca5   :  { %1151 = vrot.lane.b32.xlu1 %v2856_v59, %s2950_s24 }
 0xcaa   :  { %v2858_v63 = vpop.eup %2857 }
 0xcab   :  { %1247 = vrot.lane.b32.xlu0 %v2858_v63, %s2950_s24 }
 0xd17   :  { %v1152_v1 = vpop.permute.xlu1 %1151 }
 0xd18   :  { %v1154_v62 = vmul.f32 %v1152_v1, %v1137_v44 }
 0xd1a   :  { %1327 = vrot.lane.b32.xlu1 %v1154_v62, %s2954_s13 }
 0xd1d   :  { %v1248_v54 = vpop.permute.xlu0 %1247 }
 0xd1e   :  { %v1250_v4 = vmul.f32 %v1248_v54, %v1233_v46 }
 0xd20   :  { %1252 = vrot.lane.b32.xlu0 %v1250_v4, %s2954_s13 }
 0xd8c   :  { %v1328_v2 = vpop.permute.xlu1 %1327 }
 0xd8d   :  { %2667 = vmatmul.mubr.msk.f32.vlgmr.msra.gmra.mxu0 %vm239_vm5, %v1328_v2 }
 0xd8e   :  { %2681 = vmatpush3.msra.mxu0 %v3040_v19  ;;  %2688 = vmatprep.mubr.msk.f32.mxu0 %vm2952_vm4, %v2951_v20 }
 0xd8f   :  { %2682 = vmatprep.subr.mxu0 %v2951_v20 }
 0xd90   :  { %2683 = vmatpush3.msra.mxu0 %v3046_v21 }
 0xd91   :  { %2684 = vmatprep.subr.mxu0 %v2951_v20 }
 0xd92   :  { %v1253_v7 = vpop.permute.xlu0 %1252  ;;  %2685 = vmatpush3.msra.mxu0 %v3056_v22 }
 0xd93   :  { %2656 = vmatmul.mubr.msk.f32.vlgmr.msra.gmra.mxu1 %vm239_vm5, %v1253_v7  ;;  %2686 = vmatprep.subr.mxu0 %v2951_v20 }
 0xd94   :  { %2670 = vmatpush3.msra.mxu1 %v3083_v27  ;;  %2677 = vmatprep.mubr.msk.f32.mxu1 %vm2952_vm4, %v2951_v20 }
 0xd95   :  { %2671 = vmatprep.subr.mxu1 %v2951_v20  ;;  %2687 = vmatpush3.msra.mxu0 %v3065_v23 }
 0xd96   :  { %2672 = vmatpush3.msra.mxu1 %v3089_v29  ;;  %2702 = vmatprep.subr.mxu0 %v2951_v20 }
 0xd97   :  { %2673 = vmatprep.subr.mxu1 %v2951_v20 }
 0xd98   :  { %2674 = vmatpush3.msra.mxu1 %v3098_v30 }
 0xd99   :  { %2675 = vmatprep.subr.mxu1 %v2951_v20 }
 0xd9a   :  { %2676 = vmatpush3.msra.mxu1 %v3105_v31 }
 0xd9b   :  { %2678 = vmatmul.mubr.msk.f32.vlgmr.msra.gmra.mxu1 %vm239_vm5, %v1253_v7  ;;  %2691 = vmatprep.subr.mxu1 %v2951_v20 }
 0xd9c   :  { %2692 = vmatpush3.msra.mxu1 %v3135_v57  ;;  %2699 = vmatprep.mubr.msk.f32.mxu1 %vm2952_vm4, %v2951_v20 }
 0xd9d   :  { %2693 = vmatprep.subr.mxu1 %v2951_v20 }
 0xd9e   :  { %2694 = vmatpush3.msra.mxu1 %v3140_v58 }
 0xd9f   :  { %2695 = vmatprep.subr.mxu1 %v2951_v20 }
 0xda0   :  { %2696 = vmatpush3.msra.mxu1 %v3147_v60 }
 0xda1   :  { %2697 = vmatprep.subr.mxu1 %v2951_v20 }
 0xda2   :  { %2698 = vmatpush3.msra.mxu1 %v3155_v61 }
 0xda3   :  { %2713 = vmatprep.subr.mxu1 %v2951_v20 }
 0xe4d   :  { %v1397_v6 = vpop.f32.mrf.mxu0 }
 0xe4f   :  { %v2668_v8 = vpop.f32.mrf.mxu0 }
 0xe53   :  { %v1322_v9 = vpop.f32.mrf.mxu1 }
 0xe54   :  { %v1323_v3 = vadd.f32 %v3117_v32, %v1322_v9 }
 0xe55   :  { %v2657_v0 = vpop.f32.mrf.mxu1 }
 0xe56   :  { %v1401_v10 = vadd.f32 %v1397_v6, %v1323_v3 }
 0xe58   :  { %v2367_v11 = vmul.f32 -1.442695, %v1401_v10 }
 0xe5a   :  { %2859 = vpow2.f32 %v2367_v11 }
 0xe5b   :  { %v1493_v14 = vpop.f32.mrf.mxu1 }
 0xe5c   :  { %v1497_v15 = vadd.f32 %v1493_v14, %v180_v12 }
 0xe5d   :  { %v2679_v16 = vpop.f32.mrf.mxu1 }
 0xe5e   :  { %v2369_v17 = vmul.f32 -1.442695, %v1497_v15 }
 0xe60   :  { %2861 = vpow2.f32 %v2369_v17 }
 0xe61   :  { %2863 = vtanh.f32 %v1401_v10 }
 0xe67   :  { %v2860_v24 = vpop.eup %2859 }
 0xe68   :  { %v1406_v34 = vadd.f32 1.0, %v2860_v24 }
 0xe6a   :  { %2865 = vrcp.f32 %v1406_v34 }
 0xe6b   :  { %2867 = vtanh.f32 %v1497_v15 }
 0xe6d   :  { %v2862_v35 = vpop.eup %2861 }
 0xe6e   :  { %v1502_v36 = vadd.f32 1.0, %v2862_v35  ;;  %v2864_v37 = vpop.eup %2863 }
 0xe70   :  { %2869 = vrcp.f32 %v1502_v36 }
 0xe77   :  { %v2866_v38 = vpop.eup %2865 }
 0xe78   :  { %v1409_v39 = vsel %vm3030_vm3, %v2864_v37, %v2866_v38  ;;  %v2868_v5 = vpop.eup %2867 }
 0xe79   :  { %1412 = vrot.lane.b32.xlu1 %v1409_v39, %s2950_s24  ;;  %v1410_v26 = vmul.f32 %v1409_v39, %v3360_v52 }
 0xe7d   :  { %v2870_v25 = vpop.eup %2869 }
 0xe7e   :  { %v1505_v40 = vsel %vm3030_vm3, %v2868_v5, %v2870_v25 }
 0xe7f   :  { %1508 = vrot.lane.b32.xlu0 %v1505_v40, %s2950_s24  ;;  %v1506_v47 = vmul.f32 %v1505_v40, %v3364_v56 }
 0xeeb   :  { %v1413_v41 = vpop.permute.xlu1 %1412 }
 0xeec   :  { %v1415_v42 = vmul.f32 %v1413_v41, %v1409_v39 }
 0xeee   :  { %1417 = vrot.lane.b32.xlu1 %v1415_v42, %s2954_s13  ;;  %v2916_v42 = vld [vmem:[%s3579_s4 + $0x18] sm:$0xff] }
 0xef1   :  { %v1509_v43 = vpop.permute.xlu0 %1508 }
 0xef2   :  { %v1511_v44 = vmul.f32 %v1509_v43, %v1505_v40  ;;  %v2917_v43 = vld [vmem:[%s3579_s4 + $0x10] sm:$0xff] }
 0xef4   :  { %1513 = vrot.lane.b32.xlu0 %v1511_v44, %s2954_s13 }
 0xf60   :  { %v1418_v45 = vpop.permute.xlu1 %1417 }
 0xf61   :  { %v3416_v46 = vadd.f32 %v1418_v45, %v1410_v26  ;;  %v2918_v26 = vld [vmem:[%s3579_s4 + $0x8] sm:$0xff]  ;;  %v2919_v45 = vld [vmem:[%s3577_s2 + $0x18] sm:$0xff] }
 0xf63   :  { %2871 = vtanh.f32 %v3416_v46 }
 0xf66   :  { %v1514_v18 = vpop.permute.xlu0 %1513 }
 0xf67   :  { %v3420_v48 = vadd.f32 %v1514_v18, %v1506_v47  ;;  %v2921_v47 = vld [vmem:[%s3577_s2 + $0x10] sm:$0xff]  ;;  %v2922_v18 = vld [vmem:[%s3577_s2 + $0x8] sm:$0xff] }
 0xf69   :  { %2873 = vtanh.f32 %v3420_v48 }
 0xf70   :  { %v2872_v49 = vpop.eup %2871 }
 0xf71   :  { %1423 = vrot.lane.b32.xlu1 %v2872_v49, %s2950_s24 }
 0xf76   :  { %v2874_v50 = vpop.eup %2873 }
 0xf77   :  { %1519 = vrot.lane.b32.xlu0 %v2874_v50, %s2950_s24 }
 0xfe3   :  { %v1424_v51 = vpop.permute.xlu1 %1423 }
 0xfe4   :  { %v1426_v52 = vmul.f32 %v1424_v51, %v1409_v39 }
 0xfe6   :  { %1599 = vrot.lane.b32.xlu1 %v1426_v52, %s2954_s13 }
 0xfe9   :  { %v1520_v53 = vpop.permute.xlu0 %1519 }
 0xfea   :  { %v1522_v55 = vmul.f32 %v1520_v53, %v1505_v40 }
 0xfec   :  { %1524 = vrot.lane.b32.xlu0 %v1522_v55, %s2954_s13 }
0x1058   :  { %v1600_v56 = vpop.permute.xlu1 %1599 }
0x1059   :  { %2700 = vmatmul.mubr.msk.f32.vlgmr.msra.gmra.mxu1 %vm239_vm5, %v1600_v56 }
0x105a   :  { %2714 = vmatpush3.msra.mxu1 %v3040_v19  ;;  %2721 = vmatprep.mubr.msk.f32.mxu1 %vm2952_vm4, %v2951_v20 }
0x105b   :  { %2715 = vmatprep.subr.mxu1 %v2951_v20 }
0x105c   :  { %2716 = vmatpush3.msra.mxu1 %v3046_v21 }
0x105d   :  { %2717 = vmatprep.subr.mxu1 %v2951_v20 }
0x105e   :  { %v1525_v59 = vpop.permute.xlu0 %1524  ;;  %2718 = vmatpush3.msra.mxu1 %v3056_v22 }
0x105f   :  { %2689 = vmatmul.mubr.msk.f32.vlgmr.msra.gmra.mxu0 %vm239_vm5, %v1525_v59  ;;  %2719 = vmatprep.subr.mxu1 %v2951_v20 }
0x1060   :  { %2703 = vmatpush3.msra.mxu0 %v3083_v27  ;;  %2710 = vmatprep.mubr.msk.f32.mxu0 %vm2952_vm4, %v2951_v20 }
0x1061   :  { %2704 = vmatprep.subr.mxu0 %v2951_v20  ;;  %2720 = vmatpush3.msra.mxu1 %v3065_v23 }
0x1062   :  { %2705 = vmatpush3.msra.mxu0 %v3089_v29  ;;  %2735 = vmatprep.subr.mxu1 %v2951_v20 }
0x1063   :  { %2706 = vmatprep.subr.mxu0 %v2951_v20 }
0x1064   :  { %2707 = vmatpush3.msra.mxu0 %v3098_v30 }
0x1065   :  { %2708 = vmatprep.subr.mxu0 %v2951_v20 }
0x1066   :  { %2709 = vmatpush3.msra.mxu0 %v3105_v31  ;;  %v3464_v31 = vld [vmem:[%s3578_s3] ss:$0 sm:$0xff] }
0x1067   :  { %2711 = vmatmul.mubr.msk.f32.vlgmr.msra.gmra.mxu0 %vm239_vm5, %v1525_v59  ;;  %2724 = vmatprep.subr.mxu0 %v2951_v20  ;;  %v185_v63 = vadd.f32 %v3464_v31, %v3234_v33 }
0x1068   :  { %2725 = vmatpush3.msra.mxu0 %v3135_v57  ;;  %2732 = vmatprep.mubr.msk.f32.mxu0 %vm2952_vm4, %v2951_v20 }
0x1069   :  { %2726 = vmatprep.subr.mxu0 %v2951_v20 }
0x106a   :  { %2727 = vmatpush3.msra.mxu0 %v3140_v58 }
0x106b   :  { %2728 = vmatprep.subr.mxu0 %v2951_v20 }
0x106c   :  { %2729 = vmatpush3.msra.mxu0 %v3147_v60 }
0x106d   :  { %2730 = vmatprep.subr.mxu0 %v2951_v20 }
0x106e   :  { %2731 = vmatpush3.msra.mxu0 %v3155_v61 }
0x106f   :  { %2746 = vmatprep.subr.mxu0 %v2951_v20 }
0x1119   :  { %v1669_v19 = vpop.f32.mrf.mxu1 }
0x111b   :  { %v2701_v21 = vpop.f32.mrf.mxu1 }
0x111f   :  { %v1594_v22 = vpop.f32.mrf.mxu0 }
0x1120   :  { %v1595_v23 = vadd.f32 %v3117_v32, %v1594_v22 }
0x1121   :  { %v2690_v27 = vpop.f32.mrf.mxu0 }
0x1122   :  { %v1673_v29 = vadd.f32 %v1669_v19, %v1595_v23 }
0x1124   :  { %v2372_v30 = vmul.f32 -1.442695, %v1673_v29 }
0x1126   :  { %2875 = vpow2.f32 %v2372_v30 }
0x1127   :  { %v1765_v1 = vpop.f32.mrf.mxu0 }
0x1128   :  { %v1769_v62 = vadd.f32 %v1765_v1, %v185_v63 }
0x1129   :  { %v2712_v54 = vpop.f32.mrf.mxu0 }
0x112a   :  { %v2374_v4 = vmul.f32 -1.442695, %v1769_v62 }
0x112c   :  { %2877 = vpow2.f32 %v2374_v4 }
0x112d   :  { %2879 = vtanh.f32 %v1673_v29 }
0x1133   :  { %v2876_v2 = vpop.eup %2875 }
0x1134   :  { %v1678_v7 = vadd.f32 1.0, %v2876_v2 }
0x1136   :  { %2881 = vrcp.f32 %v1678_v7 }
0x1137   :  { %2883 = vtanh.f32 %v1769_v62 }
0x1139   :  { %v2878_v32 = vpop.eup %2877 }
0x113a   :  { %v1774_v6 = vadd.f32 1.0, %v2878_v32  ;;  %v2880_v8 = vpop.eup %2879 }
0x113c   :  { %2885 = vrcp.f32 %v1774_v6 }
0x1143   :  { %v2882_v9 = vpop.eup %2881 }
0x1144   :  { %v1681_v3 = vsel %vm3030_vm3, %v2880_v8, %v2882_v9  ;;  %v2884_v33 = vpop.eup %2883 }
0x1145   :  { %1684 = vrot.lane.b32.xlu1 %v1681_v3, %s2950_s24  ;;  %v1682_v16 = vmul.f32 %v1681_v3, %v3416_v46  ;;  %v2920_v46 = vld [vmem:[%s3579_s4] sm:$0xff] }
0x1149   :  { %v2886_v0 = vpop.eup %2885 }
0x114a   :  { %v1777_v10 = vsel %vm3030_vm3, %v2884_v33, %v2886_v0 }
0x114b   :  { %1780 = vrot.lane.b32.xlu0 %v1777_v10, %s2950_s24  ;;  %v1778_v34 = vmul.f32 %v1777_v10, %v3420_v48  ;;  %v2923_v48 = vld [vmem:[%s3577_s2] sm:$0xff] }
0x11b7   :  { %v1685_v11 = vpop.permute.xlu1 %1684 }
0x11b8   :  { %v1687_v12 = vmul.f32 %v1685_v11, %v1681_v3 }
0x11ba   :  { %1689 = vrot.lane.b32.xlu1 %v1687_v12, %s2954_s13 }
0x11bd   :  { %v1781_v14 = vpop.permute.xlu0 %1780 }
0x11be   :  { %v1783_v15 = vmul.f32 %v1781_v14, %v1777_v10 }
0x11c0   :  { %1785 = vrot.lane.b32.xlu0 %v1783_v15, %s2954_s13 }
0x122c   :  { %v1690_v17 = vpop.permute.xlu1 %1689 }
0x122d   :  { %v3477_v24 = vadd.f32 %v1690_v17, %v1682_v16 }
0x122f   :  { %2887 = vtanh.f32 %v3477_v24 }
0x1232   :  { %v1786_v35 = vpop.permute.xlu0 %1785 }
0x1233   :  { %v3481_v36 = vadd.f32 %v1786_v35, %v1778_v34 }
0x1235   :  { %2889 = vtanh.f32 %v3481_v36 }
0x123c   :  { %v2888_v37 = vpop.eup %2887 }
0x123d   :  { %1695 = vrot.lane.b32.xlu1 %v2888_v37, %s2950_s24 }
0x1242   :  { %v2890_v38 = vpop.eup %2889 }
0x1243   :  { %1791 = vrot.lane.b32.xlu0 %v2890_v38, %s2950_s24 }
0x12af   :  { %v1696_v39 = vpop.permute.xlu1 %1695 }
0x12b0   :  { %v1698_v5 = vmul.f32 %v1696_v39, %v1681_v3 }
0x12b2   :  { %1871 = vrot.lane.b32.xlu1 %v1698_v5, %s2954_s13 }
0x12b5   :  { %v1792_v25 = vpop.permute.xlu0 %1791 }
0x12b6   :  { %v1794_v40 = vmul.f32 %v1792_v25, %v1777_v10 }
0x12b8   :  { %1796 = vrot.lane.b32.xlu0 %v1794_v40, %s2954_s13 }
0x1324   :  { %v1872_v41 = vpop.permute.xlu1 %1871 }
0x1325   :  { %2733 = vmatmul.mubr.msk.f32.vlgmr.msra.gmra.mxu0 %vm239_vm5, %v1872_v41 }
0x1326   :  { %2747 = vmatpush3.msra.mxu0 %v2916_v42  ;;  %2754 = vmatprep.mubr.msk.f32.mxu0 %vm2952_vm4, %v2951_v20 }
0x1327   :  { %2748 = vmatprep.subr.mxu0 %v2951_v20 }
0x1328   :  { %2749 = vmatpush3.msra.mxu0 %v2917_v43 }
0x1329   :  { %2750 = vmatprep.subr.mxu0 %v2951_v20 }
0x132a   :  { %v1797_v44 = vpop.permute.xlu0 %1796  ;;  %2751 = vmatpush3.msra.mxu0 %v2918_v26 }
0x132b   :  { %2722 = vmatmul.mubr.msk.f32.vlgmr.msra.gmra.mxu1 %vm239_vm5, %v1797_v44  ;;  %2752 = vmatprep.subr.mxu0 %v2951_v20 }
0x132c   :  { %2736 = vmatpush3.msra.mxu1 %v2919_v45  ;;  %2743 = vmatprep.mubr.msk.f32.mxu1 %vm2952_vm4, %v2951_v20 }
0x132d   :  { %2737 = vmatprep.subr.mxu1 %v2951_v20  ;;  %2753 = vmatpush3.msra.mxu0 %v2920_v46  ;;  %v2246_v46 = vld [vmem:[#allocation2 + $0x18] sm:$0xff] }
0x132e   :  { %2738 = vmatpush3.msra.mxu1 %v2921_v47  ;;  %2768 = vmatprep.subr.mxu0 %v2951_v20  ;;  %v2245_v47 = vld [vmem:[#allocation2 + $0x10] sm:$0xff] }
0x132f   :  { %2739 = vmatprep.subr.mxu1 %v2951_v20 }
0x1330   :  { %2740 = vmatpush3.msra.mxu1 %v2922_v18  ;;  %v2244_v18 = vld [vmem:[#allocation2 + $0x8] sm:$0xff] }
0x1331   :  { %2741 = vmatprep.subr.mxu1 %v2951_v20 }
0x1332   :  { %2742 = vmatpush3.msra.mxu1 %v2923_v48 }
0x1333   :  { %2744 = vmatmul.mubr.msk.f32.vlgmr.msra.gmra.mxu1 %vm239_vm5, %v1797_v44  ;;  %2757 = vmatprep.subr.mxu1 %v2951_v20 }
0x1334   :  { %2758 = vmatpush3.msra.mxu1 %v3135_v57  ;;  %2765 = vmatprep.mubr.msk.f32.mxu1 %vm2952_vm4, %v2951_v20  ;;  %v2924_v57 = vld [vmem:[%s3581_s6] ss:$0 sm:$0xff] }
0x1335   :  { %2759 = vmatprep.subr.mxu1 %v2951_v20 }
0x1336   :  { %2760 = vmatpush3.msra.mxu1 %v3140_v58  ;;  %v190_v58 = vadd.f32 %v3464_v31, %v3232_v28 }
0x1337   :  { %2761 = vmatprep.subr.mxu1 %v2951_v20 }
0x1338   :  { %2762 = vmatpush3.msra.mxu1 %v3147_v60 }
0x1339   :  { %2763 = vmatprep.subr.mxu1 %v2951_v20 }
0x133a   :  { %2764 = vmatpush3.msra.mxu1 %v3155_v61 }
0x13e5   :  { %v1941_v49 = vpop.f32.mrf.mxu0 }
0x13e7   :  { %v2734_v50 = vpop.f32.mrf.mxu0 }
0x13eb   :  { %v1866_v51 = vpop.f32.mrf.mxu1 }
0x13ec   :  { %v1867_v52 = vadd.f32 %v2924_v57, %v1866_v51 }
0x13ed   :  { %v2723_v53 = vpop.f32.mrf.mxu1 }
0x13ee   :  { %v1945_v55 = vadd.f32 %v1941_v49, %v1867_v52 }
0x13f0   :  { %v2377_v56 = vmul.f32 -1.442695, %v1945_v55 }
0x13f2   :  { %2891 = vpow2.f32 %v2377_v56 }
0x13f3   :  { %v2037_v60 = vpop.f32.mrf.mxu1 }
0x13f4   :  { %v2041_v59 = vadd.f32 %v2037_v60, %v190_v58 }
0x13f5   :  { %v2745_v19 = vpop.f32.mrf.mxu1 }
0x13f6   :  { %v2379_v21 = vmul.f32 -1.442695, %v2041_v59 }
0x13f8   :  { %2893 = vpow2.f32 %v2379_v21 }
0x13f9   :  { %2895 = vtanh.f32 %v1945_v55 }
0x13ff   :  { %v2892_v61 = vpop.eup %2891 }
0x1400   :  { %v1950_v22 = vadd.f32 1.0, %v2892_v61 }
0x1402   :  { %2897 = vrcp.f32 %v1950_v22 }
0x1403   :  { %2899 = vtanh.f32 %v2041_v59 }
0x1405   :  { %v2894_v23 = vpop.eup %2893 }
0x1406   :  { %v2046_v27 = vadd.f32 1.0, %v2894_v23  ;;  %v2896_v29 = vpop.eup %2895 }
0x1408   :  { %2901 = vrcp.f32 %v2046_v27 }
0x140f   :  { %v2898_v30 = vpop.eup %2897 }
0x1410   :  { %v1953_v63 = vsel %vm3030_vm3, %v2896_v29, %v2898_v30  ;;  %v2900_v28 = vpop.eup %2899 }
0x1411   :  { %1956 = vrot.lane.b32.xlu1 %v1953_v63, %s2950_s24  ;;  %v1954_v7 = vmul.f32 %v1953_v63, %v3477_v24 }
0x1415   :  { %v2902_v31 = vpop.eup %2901 }
0x1416   :  { %v2049_v1 = vsel %vm3030_vm3, %v2900_v28, %v2902_v31 }
0x1417   :  { %2052 = vrot.lane.b32.xlu0 %v2049_v1, %s2950_s24  ;;  %v2050_v8 = vmul.f32 %v2049_v1, %v3481_v36 }
0x1483   :  { %v1957_v62 = vpop.permute.xlu1 %1956 }
0x1484   :  { %v1959_v54 = vmul.f32 %v1957_v62, %v1953_v63 }
0x1486   :  { %1961 = vrot.lane.b32.xlu1 %v1959_v54, %s2954_s13 }
0x1489   :  { %v2053_v4 = vpop.permute.xlu0 %2052 }
0x148a   :  { %v2055_v2 = vmul.f32 %v2053_v4, %v2049_v1 }
0x148c   :  { %2057 = vrot.lane.b32.xlu0 %v2055_v2, %s2954_s13 }
0x14f8   :  { %v1962_v32 = vpop.permute.xlu1 %1961 }
0x14f9   :  { %v1964_v6 = vadd.f32 %v1962_v32, %v1954_v7 }
0x14fb   :  { %2903 = vtanh.f32 %v1964_v6 }
0x14fe   :  { %v2058_v9 = vpop.permute.xlu0 %2057 }
0x14ff   :  { %v2060_v3 = vadd.f32 %v2058_v9, %v2050_v8 }
0x1501   :  { %2905 = vtanh.f32 %v2060_v3 }
0x1508   :  { %v2904_v33 = vpop.eup %2903 }
0x1509   :  { %1967 = vrot.lane.b32.xlu1 %v2904_v33, %s2950_s24 }
0x150e   :  { %v2906_v0 = vpop.eup %2905 }
0x150f   :  { %2063 = vrot.lane.b32.xlu0 %v2906_v0, %s2950_s24 }
0x157b   :  { %v1968_v10 = vpop.permute.xlu1 %1967 }
0x157c   :  { %v1970_v11 = vmul.f32 %v1968_v10, %v1953_v63 }
0x157e   :  { %2143 = vrot.lane.b32.xlu1 %v1970_v11, %s2954_s13 }
0x1581   :  { %v2064_v12 = vpop.permute.xlu0 %2063 }
0x1582   :  { %v2066_v14 = vmul.f32 %v2064_v12, %v2049_v1 }
0x1584   :  { %2068 = vrot.lane.b32.xlu0 %v2066_v14, %s2954_s13 }
0x15f0   :  { %v2144_v15 = vpop.permute.xlu1 %2143 }
0x15f1   :  { %2766 = vmatmul.mubr.msk.f32.vlgmr.msra.gmra.mxu1 %vm239_vm5, %v2144_v15 }
0x15f6   :  { %v2069_v16 = vpop.permute.xlu0 %2068 }
0x15f7   :  { %2755 = vmatmul.mubr.msk.f32.vlgmr.msra.gmra.mxu0 %vm239_vm5, %v2069_v16 }
0x15f8   :  { %2776 = vmatprep.mubr.msk.f32.mxu0 %vm2952_vm4, %v2951_v20  ;;  %2769 = vmatpush3.msra.mxu0 %v2246_v46 }
0x15f9   :  { %2770 = vmatprep.subr.mxu0 %v2951_v20 }
0x15fa   :  { %2771 = vmatpush3.msra.mxu0 %v2245_v47 }
0x15fb   :  { %2772 = vmatprep.subr.mxu0 %v2951_v20 }
0x15fc   :  { %2773 = vmatpush3.msra.mxu0 %v2244_v18 }
0x15fd   :  { %2774 = vmatprep.subr.mxu0 %v2951_v20 }
0x15fe   :  { %2775 = vmatpush3.msra.mxu0 %v2243_v13 }
0x16b1   :  { %v2213_v17 = vpop.f32.mrf.mxu1 }
0x16b3   :  { %v2767_v24 = vpop.f32.mrf.mxu1 }
0x16b7   :  { %v2138_v34 = vpop.f32.mrf.mxu0 }
0x16b8   :  { %v2139_v35 = vadd.f32 %v2924_v57, %v2138_v34  ;;  %v2383_v57 = vld [vmem:[%s3583_s8] ss:$0 sm:$0xff] }
0x16b9   :  { %v2756_v36 = vpop.f32.mrf.mxu0 }
0x16ba   :  { %v2217_v37 = vadd.f32 %v2213_v17, %v2139_v35 }
0x16bc   :  { %v2382_v38 = vmul.f32 -1.442695, %v2217_v37 }
0x16be   :  { %2907 = vpow2.f32 %v2382_v38 }
0x16bf   :  { %2909 = vtanh.f32 %v2217_v37 }
0x16cb   :  { %v2908_v39 = vpop.eup %2907 }
0x16cc   :  { %v2222_v5 = vadd.f32 1.0, %v2908_v39  ;;  %v2910_v25 = vpop.eup %2909 }
0x16ce   :  { %2911 = vrcp.f32 %v2222_v5 }
0x16db   :  { %v2912_v40 = vpop.eup %2911 }
0x16dc   :  { %v2225_v41 = vsel %vm3030_vm3, %v2910_v25, %v2912_v40 }
0x16dd   :  { %2228 = vrot.lane.b32.xlu0 %v2225_v41, %s2950_s24  ;;  %v2226_v44 = vmul.f32 %v2225_v41, %v1964_v6 }
0x174f   :  { %v2229_v42 = vpop.permute.xlu0 %2228 }
0x1750   :  { %v2231_v43 = vmul.f32 %v2229_v42, %v2225_v41 }
0x1752   :  { %2233 = vrot.lane.b32.xlu1 %v2231_v43, %s2954_s13 }
0x17c4   :  { %v2234_v26 = vpop.permute.xlu1 %2233 }
0x17c5   :  { %v2236_v45 = vadd.f32 %v2234_v26, %v2226_v44 }
0x17c7   :  { %2913 = vtanh.f32 %v2236_v45 }
0x17d4   :  { %v2914_v48 = vpop.eup %2913 }
0x17d5   :  { %2239 = vrot.lane.b32.xlu0 %v2914_v48, %s2950_s24 }
0x1847   :  { %v2240_v49 = vpop.permute.xlu0 %2239 }
0x1848   :  { %v2242_v50 = vmul.f32 %v2240_v49, %v2225_v41 }
0x184a   :  { %2255 = vrot.lane.b32.xlu1 %v2242_v50, %s2954_s13 }
0x18bc   :  { %v2256_v51 = vpop.permute.xlu1 %2255 }
0x18bd   :  { %2777 = vmatmul.mubr.msk.f32.vlgmr.msra.gmra.mxu0 %vm239_vm5, %v2256_v51 }
0x197d   :  { %v2325_v52 = vpop.f32.mrf.mxu0 }
0x197e   :  { %v2326_v53 = vadd.f32 %v2383_v57, %v2325_v52 }
0x197f   :  { %v2778_v55 = vpop.f32.mrf.mxu0 }
0x1980   :  { %2329 = vst [vmem:[%s3584_s9] sm:$0xff] %v2326_v53 }
0x1981   :  { %2334 = vsyncpa [#allocation3], 1 }

</bundles_post_ra>
